<compile_context>
chip_gen: v7x
topology: tpu7x:2x2x1
jax: 0.10.0
libtpu: 0.0.40
codegen_flags: <defaults>
</compile_context>

<pallas_src>
import functools

import jax
import jax.numpy as jnp
from jax.experimental import pallas as pl
from jax.experimental.pallas import tpu as pltpu

LANE = 128                      # vreg lane width
BATCH_GRANULE = 16              # bf16 sublane packing -> batch tiles % 16 == 0
DEFAULT_VMEM_BUDGET = 48 * 1024 * 1024   # conservative: fits v7x's 64 MiB/TC
# TODO(synk): on v5e/v6e (128 MiB VMEM) this budget can be raised for larger
# batch tiles / bigger resident weight stacks.


def _round_up(n, m):
    return ((n + m - 1) // m) * m


# ---------------------------------------------------------------------------
# Fused MLP kernel: all layers chained in a single kernel body.
# ---------------------------------------------------------------------------

def _fused_mlp_kernel(x_ref, *refs, n_layers, pdims):
    """refs = (w_0, ..., w_{L-1}, shift_tbl_ref, o_ref).

    a_{i+1} = relu(a_i @ w_i + shift_i)   for i < L-1
    out     = a_{L-1} @ w_{L-1} + shift_{L-1}

    w_i are bf16 (MXU native), shifts/epilogue/accumulation are f32.
    """
    o_ref = refs[-1]
    shift_ref = refs[-2]
    a = x_ref[...]                                         # f32 activations
    for i in range(n_layers):
        w = refs[i][...]                                   # bf16, VMEM-resident
        s = shift_ref[i:i + 1, : pdims[i + 1]]             # (1, pd) f32 shift
        a = jnp.dot(a.astype(jnp.bfloat16), w,
                    preferred_element_type=jnp.float32) + s
        if i < n_layers - 1:
            a = jnp.maximum(a, 0.0)                        # f32 ReLU epilogue
    o_ref[...] = a.astype(o_ref.dtype)


# ---------------------------------------------------------------------------
# Wrapper: one-time parameter prep + per-batch-size pallas_call construction.
# ---------------------------------------------------------------------------

class FusedClassifierFC:
    """ClassifierFC_spec (eval mode) as a single fused Pallas TPU kernel.

    Expects already BN/bias-folded (weights, shifts):
        W'     = W * gamma / sqrt(var + eps)
        shift' = (b - mean) * gamma / sqrt(var + eps) + beta
    """

    def __init__(self, weights, shifts, *, max_tile_b=512,
                 vmem_budget_bytes=DEFAULT_VMEM_BUDGET):
        self.n_layers = len(weights)
        dims = [int(weights[0].shape[0])] + [int(w.shape[1]) for w in weights]
        self.dims = dims
        self.pdims = [_round_up(d, LANE) for d in dims]
        self.max_pd = max(self.pdims[1:])
        self.max_tile_b = max_tile_b
        self.vmem_budget = vmem_budget_bytes

        # ---- One-time parameter prep (hoisted out of the per-call path) ----
        w_pad = []
        for i, w in enumerate(weights):
            wp = jnp.zeros((self.pdims[i], self.pdims[i + 1]), jnp.float32)
            wp = wp.at[: w.shape[0], : w.shape[1]].set(w)
            w_pad.append(wp.astype(jnp.bfloat16))          # MXU-native dtype
        shift_tbl = jnp.zeros((self.n_layers, self.max_pd), jnp.float32)
        for i, s in enumerate(shifts):
            shift_tbl = shift_tbl.at[i, : s.shape[-1]].set(
                jnp.reshape(s, (-1,)))
        self.params = tuple(jax.device_put(p) for p in (*w_pad, shift_tbl))

        self.weight_bytes = 2 * sum(
            self.pdims[i] * self.pdims[i + 1] for i in range(self.n_layers))
        self.shift_bytes = 4 * self.n_layers * self.max_pd
        # TODO(synk): if weight_bytes exceeds the per-core VMEM budget
        # (production sizes, esp. v7x where both TCs hold a copy), stream
        # weights per layer from HBM (memory_space=pl.ANY +
        # pltpu.emit_pipeline / manual double-buffer) instead of pinning them.

        self._cache = {}                 # (B, single_buf) -> (call, b_pad)
        self._single_buffer_ok = True    # pl.Buffered(1) supported?

    # -- tiling / budgeting ------------------------------------------------
    def _choose_tile_b(self, B):
        per_row_bytes = 4 * (2 * self.pdims[0] + 2 * self.pdims[-1]
                             + 2 * self.max_pd)
        avail = max(self.vmem_budget
                    - 2 * (self.weight_bytes + self.shift_bytes), 0)
        rows_cap = (avail // per_row_bytes // BATCH_GRANULE) * BATCH_GRANULE
        rows_cap = max(rows_cap, BATCH_GRANULE)
        tile_b = min(_round_up(B, BATCH_GRANULE), self.max_tile_b, rows_cap)
        # v7x megacore: give the 2 TensorCores >= 2 batch tiles once B is big.
        if B >= 256 and B <= tile_b:
            tile_b = max(_round_up(-(-B // 2), BATCH_GRANULE), BATCH_GRANULE)
        return tile_b

    # -- pallas_call construction -------------------------------------------
    def _build(self, B, single_buffer):
        pdims = self.pdims
        n_layers = self.n_layers
        tile_b = self._choose_tile_b(B)
        b_pad = _round_up(B, tile_b)
        grid = (b_pad // tile_b,)

        # Weights/shifts use a constant index_map -> stay VMEM-resident across
        # batch tiles; single-buffer them so double-buffering doesn't double
        # the dominant VMEM consumer.
        pm = dict(pipeline_mode=pl.Buffered(1)) if single_buffer else {}

        in_specs = [pl.BlockSpec((tile_b, pdims[0]), lambda i: (i, 0))]
        for li in range(n_layers):
            in_specs.append(pl.BlockSpec((pdims[li], pdims[li + 1]),
                                         lambda i: (0, 0), **pm))
        in_specs.append(pl.BlockSpec((n_layers, self.max_pd),
                                     lambda i: (0, 0), **pm))
        out_spec = pl.BlockSpec((tile_b, pdims[-1]), lambda i: (i, 0))

        # Explicit VMEM budget: resident params (+buffering) + double-buffered
        # x/out tiles + intermediate-activation headroom; clamp to a window
        # that is safe on every generation (<= 64 MiB = v7x per-TC physical).
        nbuf = 1 if single_buffer else 2
        vmem_needed = (nbuf * (self.weight_bytes + self.shift_bytes)
                       + 2 * 4 * tile_b * (pdims[0] + pdims[-1])
                       + 2 * 4 * tile_b * self.max_pd
                       + (4 << 20))
        vmem_limit = int(min(max(vmem_needed, 32 << 20), 64 << 20))

        flops = 2 * b_pad * sum(pdims[i] * pdims[i + 1]
                                for i in range(n_layers))
        bytes_accessed = (4 * b_pad * (pdims[0] + pdims[-1])
                          + self.weight_bytes + self.shift_bytes)

        kernel = functools.partial(_fused_mlp_kernel,
                                   n_layers=n_layers, pdims=tuple(pdims))
        call = pl.pallas_call(
            kernel,
            out_shape=jax.ShapeDtypeStruct((b_pad, pdims[-1]), jnp.float32),
            grid=grid,
            in_specs=in_specs,
            out_specs=out_spec,
            compiler_params=pltpu.CompilerParams(
                dimension_semantics=("parallel",),
                vmem_limit_bytes=vmem_limit),
            cost_estimate=pl.CostEstimate(
                flops=flops, transcendentals=0,
                bytes_accessed=bytes_accessed),
        )
        return call, b_pad

    # -- forward -------------------------------------------------------------
    def __call__(self, x):
        B, fin = x.shape
        assert fin == self.dims[0], (fin, self.dims[0])
        modes = (True, False) if self._single_buffer_ok else (False,)
        for single_buf in modes:
            try:
                key = (B, single_buf)
                entry = self._cache.get(key)
                if entry is None:
                    entry = self._build(B, single_buf)
                call, b_pad = entry
                x_p = jnp.pad(x.astype(jnp.float32),
                              ((0, b_pad - B), (0, self.pdims[0] - fin)))
                out = call(x_p, *self.params)[:B, : self.dims[-1]]
                out = jax.block_until_ready(out)
                self._cache[key] = entry
                return out
            except Exception:
                if not single_buf:
                    raise
                # pl.Buffered(1) rejected by this JAX build: fall back once.
                self._single_buffer_ok = False
        raise RuntimeError("unreachable")


# ---------------------------------------------------------------------------
# Parameter construction (deterministic, synthetic — no checkpoint loading).
# Mirrors ClassifierFC_spec.__init__ layer stack; BN stats are synthetic.
# ---------------------------------------------------------------------------

def init_classifier_params(key, input_size, h1, h2, h3, num_hidden,
                           num_classes):
    dims = [(input_size, h1), (h1, h2)]
    dims += [(h2, h2) for _ in range(num_hidden)]
    dims += [(h2, h3)]

    bn_eps = 1e-5
    weights, shifts, raw = [], [], []
    for (fin, fout) in dims:
        key, kw, kb, kg, kbeta, km, kv = jax.random.split(key, 7)
        w = jax.random.normal(kw, (fin, fout), jnp.float32) * 0.05
        b = jax.random.normal(kb, (1, fout), jnp.float32) * 0.05
        gamma = 1.0 + 0.1 * jax.random.normal(kg, (1, fout), jnp.float32)
        beta = 0.1 * jax.random.normal(kbeta, (1, fout), jnp.float32)
        mean = 0.1 * jax.random.normal(km, (1, fout), jnp.float32)
        var = 1.0 + 0.1 * jax.nn.softplus(
            jax.random.normal(kv, (1, fout), jnp.float32))
        raw.append(dict(w=w, b=b, gamma=gamma, beta=beta, mean=mean, var=var,
                        relu=True))
        # Fold eval-mode BN + bias into (W', shift').
        scale = gamma / jnp.sqrt(var + bn_eps)
        weights.append(w * scale)                 # per-output-column scaling
        shifts.append((b - mean) * scale + beta)

    key, kw, kb = jax.random.split(key, 3)
    fin, fout = h3, num_classes
    w = jax.random.normal(kw, (fin, fout), jnp.float32) * 0.05
    b = jax.random.normal(kb, (1, fout), jnp.float32) * 0.05
    raw.append(dict(w=w, b=b, gamma=None, beta=None, mean=None, var=None,
                    relu=False))
    weights.append(w)
    shifts.append(b)
    return weights, shifts, raw, bn_eps


def reference_forward(x, raw, bn_eps):
    """Pure-jnp f32 reference with the UNFOLDED Linear -> BN(eval) -> ReLU."""
    for p in raw:
        y = x @ p["w"] + p["b"]
        if p["gamma"] is not None:
            y = p["gamma"] * (y - p["mean"]) / jnp.sqrt(p["var"] + bn_eps) \
                + p["beta"]
        if p["relu"]:
            y = jnp.maximum(y, 0.0)
        x = y
    return x


if __name__ == "__main__":
    # Small shapes consistent with the module: a plain MLP on [B, input_size].
    B = 8
    input_size, h1, h2, h3 = 32, 64, 64, 32
    num_hidden, num_classes = 2, 8

    key = jax.random.PRNGKey(0)
    key, kx = jax.random.split(key)
    x = jax.random.normal(kx, (B, input_size), jnp.float32)

    weights, shifts, raw, bn_eps = init_classifier_params(
        key, input_size, h1, h2, h3, num_hidden, num_classes)

    model = FusedClassifierFC(weights, shifts)
    out = model(x)
    out = jax.block_until_ready(out)

    ref = reference_forward(x, raw, bn_eps)
    assert out.shape == (B, num_classes), out.shape
    # bf16 MXU inputs (f32 accumulation) -> looser tolerance vs f32 reference.
    assert jnp.allclose(out, ref, atol=2e-2, rtol=2e-2), (
        float(jnp.max(jnp.abs(out - ref))))

    print("KERNEL_OK")
</pallas_src>

<mosaic_0001>
module attributes {stable_mosaic.version = 11 : i64} {
  func.func @_fused_mlp_kernel(%arg0: i32, %arg1: memref<16x128xf32, #tpu.memory_space<vmem>>, %arg2: memref<128x128xbf16, #tpu.memory_space<vmem>>, %arg3: memref<128x128xbf16, #tpu.memory_space<vmem>>, %arg4: memref<128x128xbf16, #tpu.memory_space<vmem>>, %arg5: memref<128x128xbf16, #tpu.memory_space<vmem>>, %arg6: memref<128x128xbf16, #tpu.memory_space<vmem>>, %arg7: memref<128x128xbf16, #tpu.memory_space<vmem>>, %arg8: memref<6x128xf32, #tpu.memory_space<vmem>>, %arg9: memref<16x128xf32, #tpu.memory_space<vmem>>) attributes {dimension_semantics = [#tpu.dimension_semantics<parallel>], iteration_bounds = array<i64: 1>, scalar_prefetch = 0 : i64, scratch_operands = 0 : i64, tpu.core_type = #tpu.core_type<tc>, window_params = [{transform_indices = @transform_0, window_bounds = array<i64: 16, 128>}, {pipeline_mode = #tpu.pipeline_mode<synchronous>, transform_indices = @transform_1, window_bounds = array<i64: 128, 128>}, {pipeline_mode = #tpu.pipeline_mode<synchronous>, transform_indices = @transform_2, window_bounds = array<i64: 128, 128>}, {pipeline_mode = #tpu.pipeline_mode<synchronous>, transform_indices = @transform_3, window_bounds = array<i64: 128, 128>}, {pipeline_mode = #tpu.pipeline_mode<synchronous>, transform_indices = @transform_4, window_bounds = array<i64: 128, 128>}, {pipeline_mode = #tpu.pipeline_mode<synchronous>, transform_indices = @transform_5, window_bounds = array<i64: 128, 128>}, {pipeline_mode = #tpu.pipeline_mode<synchronous>, transform_indices = @transform_6, window_bounds = array<i64: 128, 128>}, {pipeline_mode = #tpu.pipeline_mode<synchronous>, transform_indices = @transform_7, window_bounds = array<i64: 6, 128>}, {transform_indices = @transform_8, window_bounds = array<i64: 16, 128>}]} {
    %c0 = arith.constant 0 : index
    %c0_0 = arith.constant 0 : index
    %0 = vector.load %arg1[%c0, %c0_0] : memref<16x128xf32, #tpu.memory_space<vmem>>, vector<16x128xf32>
    %c0_1 = arith.constant 0 : index
    %c0_2 = arith.constant 0 : index
    %1 = vector.load %arg2[%c0_1, %c0_2] : memref<128x128xbf16, #tpu.memory_space<vmem>>, vector<128x128xbf16>
    %c0_3 = arith.constant 0 : index
    %c0_4 = arith.constant 0 : index
    %2 = vector.load %arg8[%c0_3, %c0_4] : memref<6x128xf32, #tpu.memory_space<vmem>>, vector<1x128xf32>
    %3 = arith.truncf %0 : vector<16x128xf32> to vector<16x128xbf16>
    %cst = arith.constant dense<0.000000e+00> : vector<16x128xf32>
    %4 = tpu.matmul %3, %1, %cst {dimension_numbers = #tpu.dot_dimension_numbers<[1], [0], [0], [1], [0, 0, 1, 1], [], []>} : vector<16x128xbf16>, vector<128x128xbf16>, vector<16x128xf32> -> vector<16x128xf32>
    %5 = vector.broadcast %2 : vector<1x128xf32> to vector<16x128xf32>
    %6 = arith.addf %4, %5 : vector<16x128xf32>
    %cst_5 = arith.constant 0.000000e+00 : f32
    %7 = vector.broadcast %cst_5 : f32 to vector<16x128xf32>
    %8 = arith.maximumf %6, %7 : vector<16x128xf32>
    %c0_6 = arith.constant 0 : index
    %c0_7 = arith.constant 0 : index
    %9 = vector.load %arg3[%c0_6, %c0_7] : memref<128x128xbf16, #tpu.memory_space<vmem>>, vector<128x128xbf16>
    %c1 = arith.constant 1 : index
    %c0_8 = arith.constant 0 : index
    %10 = vector.load %arg8[%c1, %c0_8] : memref<6x128xf32, #tpu.memory_space<vmem>>, vector<1x128xf32>
    %11 = arith.truncf %8 : vector<16x128xf32> to vector<16x128xbf16>
    %cst_9 = arith.constant dense<0.000000e+00> : vector<16x128xf32>
    %12 = tpu.matmul %11, %9, %cst_9 {dimension_numbers = #tpu.dot_dimension_numbers<[1], [0], [0], [1], [0, 0, 1, 1], [], []>} : vector<16x128xbf16>, vector<128x128xbf16>, vector<16x128xf32> -> vector<16x128xf32>
    %13 = vector.broadcast %10 : vector<1x128xf32> to vector<16x128xf32>
    %14 = arith.addf %12, %13 : vector<16x128xf32>
    %cst_10 = arith.constant 0.000000e+00 : f32
    %15 = vector.broadcast %cst_10 : f32 to vector<16x128xf32>
    %16 = arith.maximumf %14, %15 : vector<16x128xf32>
    %c0_11 = arith.constant 0 : index
    %c0_12 = arith.constant 0 : index
    %17 = vector.load %arg4[%c0_11, %c0_12] : memref<128x128xbf16, #tpu.memory_space<vmem>>, vector<128x128xbf16>
    %c2 = arith.constant 2 : index
    %c0_13 = arith.constant 0 : index
    %18 = vector.load %arg8[%c2, %c0_13] : memref<6x128xf32, #tpu.memory_space<vmem>>, vector<1x128xf32>
    %19 = arith.truncf %16 : vector<16x128xf32> to vector<16x128xbf16>
    %cst_14 = arith.constant dense<0.000000e+00> : vector<16x128xf32>
    %20 = tpu.matmul %19, %17, %cst_14 {dimension_numbers = #tpu.dot_dimension_numbers<[1], [0], [0], [1], [0, 0, 1, 1], [], []>} : vector<16x128xbf16>, vector<128x128xbf16>, vector<16x128xf32> -> vector<16x128xf32>
    %21 = vector.broadcast %18 : vector<1x128xf32> to vector<16x128xf32>
    %22 = arith.addf %20, %21 : vector<16x128xf32>
    %cst_15 = arith.constant 0.000000e+00 : f32
    %23 = vector.broadcast %cst_15 : f32 to vector<16x128xf32>
    %24 = arith.maximumf %22, %23 : vector<16x128xf32>
    %c0_16 = arith.constant 0 : index
    %c0_17 = arith.constant 0 : index
    %25 = vector.load %arg5[%c0_16, %c0_17] : memref<128x128xbf16, #tpu.memory_space<vmem>>, vector<128x128xbf16>
    %c3 = arith.constant 3 : index
    %c0_18 = arith.constant 0 : index
    %26 = vector.load %arg8[%c3, %c0_18] : memref<6x128xf32, #tpu.memory_space<vmem>>, vector<1x128xf32>
    %27 = arith.truncf %24 : vector<16x128xf32> to vector<16x128xbf16>
    %cst_19 = arith.constant dense<0.000000e+00> : vector<16x128xf32>
    %28 = tpu.matmul %27, %25, %cst_19 {dimension_numbers = #tpu.dot_dimension_numbers<[1], [0], [0], [1], [0, 0, 1, 1], [], []>} : vector<16x128xbf16>, vector<128x128xbf16>, vector<16x128xf32> -> vector<16x128xf32>
    %29 = vector.broadcast %26 : vector<1x128xf32> to vector<16x128xf32>
    %30 = arith.addf %28, %29 : vector<16x128xf32>
    %cst_20 = arith.constant 0.000000e+00 : f32
    %31 = vector.broadcast %cst_20 : f32 to vector<16x128xf32>
    %32 = arith.maximumf %30, %31 : vector<16x128xf32>
    %c0_21 = arith.constant 0 : index
    %c0_22 = arith.constant 0 : index
    %33 = vector.load %arg6[%c0_21, %c0_22] : memref<128x128xbf16, #tpu.memory_space<vmem>>, vector<128x128xbf16>
    %c4 = arith.constant 4 : index
    %c0_23 = arith.constant 0 : index
    %34 = vector.load %arg8[%c4, %c0_23] : memref<6x128xf32, #tpu.memory_space<vmem>>, vector<1x128xf32>
    %35 = arith.truncf %32 : vector<16x128xf32> to vector<16x128xbf16>
    %cst_24 = arith.constant dense<0.000000e+00> : vector<16x128xf32>
    %36 = tpu.matmul %35, %33, %cst_24 {dimension_numbers = #tpu.dot_dimension_numbers<[1], [0], [0], [1], [0, 0, 1, 1], [], []>} : vector<16x128xbf16>, vector<128x128xbf16>, vector<16x128xf32> -> vector<16x128xf32>
    %37 = vector.broadcast %34 : vector<1x128xf32> to vector<16x128xf32>
    %38 = arith.addf %36, %37 : vector<16x128xf32>
    %cst_25 = arith.constant 0.000000e+00 : f32
    %39 = vector.broadcast %cst_25 : f32 to vector<16x128xf32>
    %40 = arith.maximumf %38, %39 : vector<16x128xf32>
    %c0_26 = arith.constant 0 : index
    %c0_27 = arith.constant 0 : index
    %41 = vector.load %arg7[%c0_26, %c0_27] : memref<128x128xbf16, #tpu.memory_space<vmem>>, vector<128x128xbf16>
    %c5 = arith.constant 5 : index
    %c0_28 = arith.constant 0 : index
    %42 = vector.load %arg8[%c5, %c0_28] : memref<6x128xf32, #tpu.memory_space<vmem>>, vector<1x128xf32>
    %43 = arith.truncf %40 : vector<16x128xf32> to vector<16x128xbf16>
    %cst_29 = arith.constant dense<0.000000e+00> : vector<16x128xf32>
    %44 = tpu.matmul %43, %41, %cst_29 {dimension_numbers = #tpu.dot_dimension_numbers<[1], [0], [0], [1], [0, 0, 1, 1], [], []>} : vector<16x128xbf16>, vector<128x128xbf16>, vector<16x128xf32> -> vector<16x128xf32>
    %45 = vector.broadcast %42 : vector<1x128xf32> to vector<16x128xf32>
    %46 = arith.addf %44, %45 : vector<16x128xf32>
    %c0_30 = arith.constant 0 : index
    %c0_31 = arith.constant 0 : index
    %47 = vector.load %arg9[%c0_30, %c0_31] : memref<16x128xf32, #tpu.memory_space<vmem>>, vector<16x128xf32>
    tpu.vector_store %arg9[%c0_30, %c0_31], %46 {strides = array<i32>} : memref<16x128xf32, #tpu.memory_space<vmem>>, vector<16x128xf32>,
    return
  }
  func.func @transform_0(%arg0: i32) -> (i32, i32) {
    %c0_i32 = arith.constant 0 : i32
    %c0_i32_0 = arith.constant 0 : i32
    return %arg0, %c0_i32 : i32, i32
  }
  func.func @transform_1(%arg0: i32) -> (i32, i32) {
    %c0_i32 = arith.constant 0 : i32
    %c0_i32_0 = arith.constant 0 : i32
    %c0_i32_1 = arith.constant 0 : i32
    return %c0_i32, %c0_i32_0 : i32, i32
  }
  func.func @transform_2(%arg0: i32) -> (i32, i32) {
    %c0_i32 = arith.constant 0 : i32
    %c0_i32_0 = arith.constant 0 : i32
    %c0_i32_1 = arith.constant 0 : i32
    return %c0_i32, %c0_i32_0 : i32, i32
  }
  func.func @transform_3(%arg0: i32) -> (i32, i32) {
    %c0_i32 = arith.constant 0 : i32
    %c0_i32_0 = arith.constant 0 : i32
    %c0_i32_1 = arith.constant 0 : i32
    return %c0_i32, %c0_i32_0 : i32, i32
  }
  func.func @transform_4(%arg0: i32) -> (i32, i32) {
    %c0_i32 = arith.constant 0 : i32
    %c0_i32_0 = arith.constant 0 : i32
    %c0_i32_1 = arith.constant 0 : i32
    return %c0_i32, %c0_i32_0 : i32, i32
  }
  func.func @transform_5(%arg0: i32) -> (i32, i32) {
    %c0_i32 = arith.constant 0 : i32
    %c0_i32_0 = arith.constant 0 : i32
    %c0_i32_1 = arith.constant 0 : i32
    return %c0_i32, %c0_i32_0 : i32, i32
  }
  func.func @transform_6(%arg0: i32) -> (i32, i32) {
    %c0_i32 = arith.constant 0 : i32
    %c0_i32_0 = arith.constant 0 : i32
    %c0_i32_1 = arith.constant 0 : i32
    return %c0_i32, %c0_i32_0 : i32, i32
  }
  func.func @transform_7(%arg0: i32) -> (i32, i32) {
    %c0_i32 = arith.constant 0 : i32
    %c0_i32_0 = arith.constant 0 : i32
    %c0_i32_1 = arith.constant 0 : i32
    return %c0_i32, %c0_i32_0 : i32, i32
  }
  func.func @transform_8(%arg0: i32) -> (i32, i32) {
    %c0_i32 = arith.constant 0 : i32
    %c0_i32_0 = arith.constant 0 : i32
    return %arg0, %c0_i32 : i32, i32
  }
}

module attributes {stable_mosaic.version = 11 : i64} {
  func.func @_fused_mlp_kernel(%arg0: i32, %arg1: memref<16x128xf32, #tpu.memory_space<vmem>>, %arg2: memref<128x128xbf16, #tpu.memory_space<vmem>>, %arg3: memref<128x128xbf16, #tpu.memory_space<vmem>>, %arg4: memref<128x128xbf16, #tpu.memory_space<vmem>>, %arg5: memref<128x128xbf16, #tpu.memory_space<vmem>>, %arg6: memref<128x128xbf16, #tpu.memory_space<vmem>>, %arg7: memref<128x128xbf16, #tpu.memory_space<vmem>>, %arg8: memref<6x128xf32, #tpu.memory_space<vmem>>, %arg9: memref<16x128xf32, #tpu.memory_space<vmem>>) attributes {dimension_semantics = [#tpu.dimension_semantics<parallel>], iteration_bounds = array<i64: 1>, scalar_prefetch = 0 : i64, scratch_operands = 0 : i64, tpu.core_type = #tpu.core_type<tc>, window_params = [{transform_indices = @transform_0, window_bounds = array<i64: 16, 128>}, {pipeline_mode = #tpu.pipeline_mode<synchronous>, transform_indices = @transform_1, window_bounds = array<i64: 128, 128>}, {pipeline_mode = #tpu.pipeline_mode<synchronous>, transform_indices = @transform_2, window_bounds = array<i64: 128, 128>}, {pipeline_mode = #tpu.pipeline_mode<synchronous>, transform_indices = @transform_3, window_bounds = array<i64: 128, 128>}, {pipeline_mode = #tpu.pipeline_mode<synchronous>, transform_indices = @transform_4, window_bounds = array<i64: 128, 128>}, {pipeline_mode = #tpu.pipeline_mode<synchronous>, transform_indices = @transform_5, window_bounds = array<i64: 128, 128>}, {pipeline_mode = #tpu.pipeline_mode<synchronous>, transform_indices = @transform_6, window_bounds = array<i64: 128, 128>}, {pipeline_mode = #tpu.pipeline_mode<synchronous>, transform_indices = @transform_7, window_bounds = array<i64: 6, 128>}, {transform_indices = @transform_8, window_bounds = array<i64: 16, 128>}]} {
    %c0 = arith.constant 0 : index
    %c0_0 = arith.constant 0 : index
    %0 = vector.load %arg1[%c0, %c0_0] : memref<16x128xf32, #tpu.memory_space<vmem>>, vector<16x128xf32>
    %c0_1 = arith.constant 0 : index
    %c0_2 = arith.constant 0 : index
    %1 = vector.load %arg2[%c0_1, %c0_2] : memref<128x128xbf16, #tpu.memory_space<vmem>>, vector<128x128xbf16>
    %c0_3 = arith.constant 0 : index
    %c0_4 = arith.constant 0 : index
    %2 = vector.load %arg8[%c0_3, %c0_4] : memref<6x128xf32, #tpu.memory_space<vmem>>, vector<1x128xf32>
    %3 = arith.truncf %0 : vector<16x128xf32> to vector<16x128xbf16>
    %cst = arith.constant dense<0.000000e+00> : vector<16x128xf32>
    %4 = tpu.matmul %3, %1, %cst {dimension_numbers = #tpu.dot_dimension_numbers<[1], [0], [0], [1], [0, 0, 1, 1], [], []>} : vector<16x128xbf16>, vector<128x128xbf16>, vector<16x128xf32> -> vector<16x128xf32>
    %5 = vector.broadcast %2 : vector<1x128xf32> to vector<16x128xf32>
    %6 = arith.addf %4, %5 : vector<16x128xf32>
    %cst_5 = arith.constant 0.000000e+00 : f32
    %7 = vector.broadcast %cst_5 : f32 to vector<16x128xf32>
    %8 = arith.maximumf %6, %7 : vector<16x128xf32>
    %c0_6 = arith.constant 0 : index
    %c0_7 = arith.constant 0 : index
    %9 = vector.load %arg3[%c0_6, %c0_7] : memref<128x128xbf16, #tpu.memory_space<vmem>>, vector<128x128xbf16>
    %c1 = arith.constant 1 : index
    %c0_8 = arith.constant 0 : index
    %10 = vector.load %arg8[%c1, %c0_8] : memref<6x128xf32, #tpu.memory_space<vmem>>, vector<1x128xf32>
    %11 = arith.truncf %8 : vector<16x128xf32> to vector<16x128xbf16>
    %cst_9 = arith.constant dense<0.000000e+00> : vector<16x128xf32>
    %12 = tpu.matmul %11, %9, %cst_9 {dimension_numbers = #tpu.dot_dimension_numbers<[1], [0], [0], [1], [0, 0, 1, 1], [], []>} : vector<16x128xbf16>, vector<128x128xbf16>, vector<16x128xf32> -> vector<16x128xf32>
    %13 = vector.broadcast %10 : vector<1x128xf32> to vector<16x128xf32>
    %14 = arith.addf %12, %13 : vector<16x128xf32>
    %cst_10 = arith.constant 0.000000e+00 : f32
    %15 = vector.broadcast %cst_10 : f32 to vector<16x128xf32>
    %16 = arith.maximumf %14, %15 : vector<16x128xf32>
    %c0_11 = arith.constant 0 : index
    %c0_12 = arith.constant 0 : index
    %17 = vector.load %arg4[%c0_11, %c0_12] : memref<128x128xbf16, #tpu.memory_space<vmem>>, vector<128x128xbf16>
    %c2 = arith.constant 2 : index
    %c0_13 = arith.constant 0 : index
    %18 = vector.load %arg8[%c2, %c0_13] : memref<6x128xf32, #tpu.memory_space<vmem>>, vector<1x128xf32>
    %19 = arith.truncf %16 : vector<16x128xf32> to vector<16x128xbf16>
    %cst_14 = arith.constant dense<0.000000e+00> : vector<16x128xf32>
    %20 = tpu.matmul %19, %17, %cst_14 {dimension_numbers = #tpu.dot_dimension_numbers<[1], [0], [0], [1], [0, 0, 1, 1], [], []>} : vector<16x128xbf16>, vector<128x128xbf16>, vector<16x128xf32> -> vector<16x128xf32>
    %21 = vector.broadcast %18 : vector<1x128xf32> to vector<16x128xf32>
    %22 = arith.addf %20, %21 : vector<16x128xf32>
    %cst_15 = arith.constant 0.000000e+00 : f32
    %23 = vector.broadcast %cst_15 : f32 to vector<16x128xf32>
    %24 = arith.maximumf %22, %23 : vector<16x128xf32>
    %c0_16 = arith.constant 0 : index
    %c0_17 = arith.constant 0 : index
    %25 = vector.load %arg5[%c0_16, %c0_17] : memref<128x128xbf16, #tpu.memory_space<vmem>>, vector<128x128xbf16>
    %c3 = arith.constant 3 : index
    %c0_18 = arith.constant 0 : index
    %26 = vector.load %arg8[%c3, %c0_18] : memref<6x128xf32, #tpu.memory_space<vmem>>, vector<1x128xf32>
    %27 = arith.truncf %24 : vector<16x128xf32> to vector<16x128xbf16>
    %cst_19 = arith.constant dense<0.000000e+00> : vector<16x128xf32>
    %28 = tpu.matmul %27, %25, %cst_19 {dimension_numbers = #tpu.dot_dimension_numbers<[1], [0], [0], [1], [0, 0, 1, 1], [], []>} : vector<16x128xbf16>, vector<128x128xbf16>, vector<16x128xf32> -> vector<16x128xf32>
    %29 = vector.broadcast %26 : vector<1x128xf32> to vector<16x128xf32>
    %30 = arith.addf %28, %29 : vector<16x128xf32>
    %cst_20 = arith.constant 0.000000e+00 : f32
    %31 = vector.broadcast %cst_20 : f32 to vector<16x128xf32>
    %32 = arith.maximumf %30, %31 : vector<16x128xf32>
    %c0_21 = arith.constant 0 : index
    %c0_22 = arith.constant 0 : index
    %33 = vector.load %arg6[%c0_21, %c0_22] : memref<128x128xbf16, #tpu.memory_space<vmem>>, vector<128x128xbf16>
    %c4 = arith.constant 4 : index
    %c0_23 = arith.constant 0 : index
    %34 = vector.load %arg8[%c4, %c0_23] : memref<6x128xf32, #tpu.memory_space<vmem>>, vector<1x128xf32>
    %35 = arith.truncf %32 : vector<16x128xf32> to vector<16x128xbf16>
    %cst_24 = arith.constant dense<0.000000e+00> : vector<16x128xf32>
    %36 = tpu.matmul %35, %33, %cst_24 {dimension_numbers = #tpu.dot_dimension_numbers<[1], [0], [0], [1], [0, 0, 1, 1], [], []>} : vector<16x128xbf16>, vector<128x128xbf16>, vector<16x128xf32> -> vector<16x128xf32>
    %37 = vector.broadcast %34 : vector<1x128xf32> to vector<16x128xf32>
    %38 = arith.addf %36, %37 : vector<16x128xf32>
    %cst_25 = arith.constant 0.000000e+00 : f32
    %39 = vector.broadcast %cst_25 : f32 to vector<16x128xf32>
    %40 = arith.maximumf %38, %39 : vector<16x128xf32>
    %c0_26 = arith.constant 0 : index
    %c0_27 = arith.constant 0 : index
    %41 = vector.load %arg7[%c0_26, %c0_27] : memref<128x128xbf16, #tpu.memory_space<vmem>>, vector<128x128xbf16>
    %c5 = arith.constant 5 : index
    %c0_28 = arith.constant 0 : index
    %42 = vector.load %arg8[%c5, %c0_28] : memref<6x128xf32, #tpu.memory_space<vmem>>, vector<1x128xf32>
    %43 = arith.truncf %40 : vector<16x128xf32> to vector<16x128xbf16>
    %cst_29 = arith.constant dense<0.000000e+00> : vector<16x128xf32>
    %44 = tpu.matmul %43, %41, %cst_29 {dimension_numbers = #tpu.dot_dimension_numbers<[1], [0], [0], [1], [0, 0, 1, 1], [], []>} : vector<16x128xbf16>, vector<128x128xbf16>, vector<16x128xf32> -> vector<16x128xf32>
    %45 = vector.broadcast %42 : vector<1x128xf32> to vector<16x128xf32>
    %46 = arith.addf %44, %45 : vector<16x128xf32>
    %c0_30 = arith.constant 0 : index
    %c0_31 = arith.constant 0 : index
    %47 = vector.load %arg9[%c0_30, %c0_31] : memref<16x128xf32, #tpu.memory_space<vmem>>, vector<16x128xf32>
    tpu.vector_store %arg9[%c0_30, %c0_31], %46 {strides = array<i32>} : memref<16x128xf32, #tpu.memory_space<vmem>>, vector<16x128xf32>,
    return
  }
  func.func @transform_0(%arg0: i32) -> (i32, i32) {
    %c0_i32 = arith.constant 0 : i32
    %c0_i32_0 = arith.constant 0 : i32
    return %arg0, %c0_i32 : i32, i32
  }
  func.func @transform_1(%arg0: i32) -> (i32, i32) {
    %c0_i32 = arith.constant 0 : i32
    %c0_i32_0 = arith.constant 0 : i32
    %c0_i32_1 = arith.constant 0 : i32
    return %c0_i32, %c0_i32_0 : i32, i32
  }
  func.func @transform_2(%arg0: i32) -> (i32, i32) {
    %c0_i32 = arith.constant 0 : i32
    %c0_i32_0 = arith.constant 0 : i32
    %c0_i32_1 = arith.constant 0 : i32
    return %c0_i32, %c0_i32_0 : i32, i32
  }
  func.func @transform_3(%arg0: i32) -> (i32, i32) {
    %c0_i32 = arith.constant 0 : i32
    %c0_i32_0 = arith.constant 0 : i32
    %c0_i32_1 = arith.constant 0 : i32
    return %c0_i32, %c0_i32_0 : i32, i32
  }
  func.func @transform_4(%arg0: i32) -> (i32, i32) {
    %c0_i32 = arith.constant 0 : i32
    %c0_i32_0 = arith.constant 0 : i32
    %c0_i32_1 = arith.constant 0 : i32
    return %c0_i32, %c0_i32_0 : i32, i32
  }
  func.func @transform_5(%arg0: i32) -> (i32, i32) {
    %c0_i32 = arith.constant 0 : i32
    %c0_i32_0 = arith.constant 0 : i32
    %c0_i32_1 = arith.constant 0 : i32
    return %c0_i32, %c0_i32_0 : i32, i32
  }
  func.func @transform_6(%arg0: i32) -> (i32, i32) {
    %c0_i32 = arith.constant 0 : i32
    %c0_i32_0 = arith.constant 0 : i32
    %c0_i32_1 = arith.constant 0 : i32
    return %c0_i32, %c0_i32_0 : i32, i32
  }
  func.func @transform_7(%arg0: i32) -> (i32, i32) {
    %c0_i32 = arith.constant 0 : i32
    %c0_i32_0 = arith.constant 0 : i32
    %c0_i32_1 = arith.constant 0 : i32
    return %c0_i32, %c0_i32_0 : i32, i32
  }
  func.func @transform_8(%arg0: i32) -> (i32, i32) {
    %c0_i32 = arith.constant 0 : i32
    %c0_i32_0 = arith.constant 0 : i32
    return %arg0, %c0_i32 : i32, i32
  }
}

</mosaic_0001>

<bundles_post_ra>
// kernel: tpu_custom_call.1
= control target key start
LH: loop header
LB: loop body
LE: loop exit
PB: predicated region body
PF: predicated region fallthrough
CT: control target
= control target key end

     0   :  { %13 = vsyncpa [#allocation3], 0  ;;  %s1566_s0 = inlined_call_operand.hbm [shape: f32[16,128], index: 0, kind: input, shape index: {}]   ;;  %s1567_s1 = inlined_call_operand.hbm [shape: bf16[128,128], index: 1, kind: input, shape index: {}]   ;;  %s1568_s2 = inlined_call_operand.hbm [shape: bf16[128,128], index: 2, kind: input, shape index: {}]   ;;  %s1569_s3 = inlined_call_operand.hbm [shape: bf16[128,128], index: 3, kind: input, shape index: {}]   ;;  %s1570_s4 = inlined_call_operand.hbm [shape: bf16[128,128], index: 4, kind: input, shape index: {}]   ;;  %s1571_s5 = inlined_call_operand.hbm [shape: bf16[128,128], index: 5, kind: input, shape index: {}]   ;;  %s1572_s6 = inlined_call_operand.hbm [shape: bf16[128,128], index: 6, kind: input, shape index: {}]   ;;  %s1573_s7 = inlined_call_operand.vmem [shape: f32[6,128], index: 7, kind: input, shape index: {}]   ;;  %s1574_s8 = inlined_call_operand.hbm [shape: f32[16,128], index: 8, kind: output, shape index: {}]  }
   0x1   :  { %14 = vsyncpa [#allocation6], 0 }
   0x2   :  { %15 = vsyncpa [#allocation9], 0 }
   0x3   :  { %16 = vsyncpa [#allocation12], 0 }
   0x4   :  { %17 = vsyncpa [#allocation4], 0  ;;  %s1302_s27 = smov [#allocation5]   ;;  %s1116_s9 = scalar_lea.hbm %s1567_s1, 1024 }
   0x5   :  { %s35_s28 = sshll.u32 %s1302_s27, 4  ;;  %p1117_p0 = scmp.ne.s32.totalorder %s1567_s1, %s1116_s9  ;;  %s36_s28 = int_to_ptr.vmem [resolvable:$true] %s35_s28 }
   0x6   :  { %p1120_p1 = scmp.lt.u32.totalorder %s1116_s9, %s1567_s1 }
   0x8   :  { %p1122_p2 = pnand %p1120_p1, %p1117_p0 }
   0xa   :  { %1125 = shalt.err (!%p1122_p2)
}
   0xb   :  { %s1126_s14 = scalar_lea.vmem %s36_s28, 1024  ;;  %p1131_p4 = scmp.lt.s32.totalorder %s36_s28, %s36_s28 }
   0xc   :  { %p1127_p3 = scmp.ne.s32.totalorder %s36_s28, %s1126_s14  ;;  %p1132_p5 = scmp.lt.s32.totalorder %s1126_s14, %s1126_s14 }
   0xe   :  { %p1133_p6 = por %p1132_p5, %p1131_p4 }
  0x10   :  { %p1134_p7 = pnand %p1133_p6, %p1127_p3 }
  0x12   :  { %1137 = shalt.err (!%p1134_p7)
}
  0x13   :  { %s1303_s15 = smov 64   ;;  %s1304_s16 = smov 4  }
  0x14   :  { %41 = dma.hbm_to_vmem [thread:$0]  %s1567_s1, 1024, %s36_s28, [#allocation6], %s1303_s15, %s1303_s15, %s1304_s16  }
  0x15   :  { %s1305_s19 = smov [#allocation8]   ;;  %s1306_s21 = smov [#allocation11]  }
  0x16   :  { %s59_s20 = sshll.u32 %s1305_s19, 4  ;;  %s83_s22 = sshll.u32 %s1306_s21, 4  ;;  %s60_s20 = int_to_ptr.vmem [resolvable:$true] %s59_s20  ;;  %s84_s22 = int_to_ptr.vmem [resolvable:$true] %s83_s22 }
  0x17   :  { %s1138_s25 = scalar_lea.hbm %s1569_s3, 1024 }
  0x18   :  { %p1139_p8 = scmp.ne.s32.totalorder %s1569_s3, %s1138_s25  ;;  %p1142_p9 = scmp.lt.u32.totalorder %s1138_s25, %s1569_s3 }
  0x1a   :  { %p1144_p10 = pnand %p1142_p9, %p1139_p8 }
  0x1c   :  { %1147 = shalt.err (!%p1144_p10)
}
  0x1d   :  { %s1148_s1 = scalar_lea.vmem %s60_s20, 1024  ;;  %p1153_p12 = scmp.lt.s32.totalorder %s60_s20, %s60_s20 }
  0x1e   :  { %p1149_p11 = scmp.ne.s32.totalorder %s60_s20, %s1148_s1  ;;  %p1154_p13 = scmp.lt.s32.totalorder %s1148_s1, %s1148_s1 }
  0x20   :  { %p1155_p0 = por %p1154_p13, %p1153_p12 }
  0x22   :  { %p1156_p1 = pnand %p1155_p0, %p1149_p11 }
  0x24   :  { %1159 = shalt.err (!%p1156_p1)
}
  0x25   :  { %65 = dma.hbm_to_vmem [thread:$0]  %s1569_s3, 1024, %s60_s20, [#allocation9], %s1303_s15, %s1303_s15, %s1304_s16  }
  0x26   :  { %s1160_s12 = scalar_lea.hbm %s1571_s5, 1024 }
  0x27   :  { %p1161_p2 = scmp.ne.s32.totalorder %s1571_s5, %s1160_s12  ;;  %p1164_p3 = scmp.lt.u32.totalorder %s1160_s12, %s1571_s5 }
  0x29   :  { %p1166_p4 = pnand %p1164_p3, %p1161_p2 }
  0x2b   :  { %1169 = shalt.err (!%p1166_p4)
}
  0x2c   :  { %s1170_s19 = scalar_lea.vmem %s84_s22, 1024  ;;  %p1175_p6 = scmp.lt.s32.totalorder %s84_s22, %s84_s22 }
  0x2d   :  { %p1171_p5 = scmp.ne.s32.totalorder %s84_s22, %s1170_s19  ;;  %p1176_p7 = scmp.lt.s32.totalorder %s1170_s19, %s1170_s19 }
  0x2f   :  { %p1177_p8 = por %p1176_p7, %p1175_p6 }
  0x31   :  { %p1178_p9 = pnand %p1177_p8, %p1171_p5 }
  0x33   :  { %1181 = shalt.err (!%p1178_p9)
}
  0x34   :  { %89 = dma.hbm_to_vmem [thread:$0]  %s1571_s5, 1024, %s84_s22, [#allocation12], %s1303_s15, %s1303_s15, %s1304_s16  }
  0x35   :  { %s1307_s21 = smov [#allocation2]   ;;  %s1182_s26 = scalar_lea.hbm %s1566_s0, 256 }
  0x36   :  { %s23_s23 = sshll.u32 %s1307_s21, 4  ;;  %p1183_p10 = scmp.ne.s32.totalorder %s1566_s0, %s1182_s26  ;;  %s24_s23 = int_to_ptr.vmem [resolvable:$true] %s23_s23 }
  0x37   :  { %p1186_p11 = scmp.lt.u32.totalorder %s1182_s26, %s1566_s0 }
  0x39   :  { %p1188_p12 = pnand %p1186_p11, %p1183_p10 }
  0x3b   :  { %1191 = shalt.err (!%p1188_p12)
}
  0x3c   :  { %s1192_s28 = scalar_lea.vmem %s24_s23, 256  ;;  %p1197_p0 = scmp.lt.s32.totalorder %s24_s23, %s24_s23 }
  0x3d   :  { %p1193_p13 = scmp.ne.s32.totalorder %s24_s23, %s1192_s28  ;;  %p1198_p1 = scmp.lt.s32.totalorder %s1192_s28, %s1192_s28 }
  0x3f   :  { %p1199_p2 = por %p1198_p1, %p1197_p0 }
  0x41   :  { %p1200_p3 = pnand %p1199_p2, %p1193_p13 }
  0x43   :  { %1203 = shalt.err (!%p1200_p3)
}
  0x44   :  { %s1308_s5 = smov 128   ;;  %s1309_s22 = smov 8  }
  0x45   :  { %29 = dma.hbm_to_vmem [thread:$0]  %s1566_s0, 256, %s24_s23, [#allocation3], %s1308_s5, %s1308_s5, %s1309_s22  }
  0x46   :  { %s1310_s11 = smov [#allocation7]   ;;  %s1311_s13 = smov [#allocation10]  }
  0x47   :  { %s47_s12 = sshll.u32 %s1310_s11, 4  ;;  %s71_s14 = sshll.u32 %s1311_s13, 4  ;;  %s48_s12 = int_to_ptr.vmem [resolvable:$true] %s47_s12  ;;  %s1421_s14 = int_to_ptr.vmem [resolvable:$true] %s71_s14 }
  0x48   :  { %s1204_s19 = scalar_lea.hbm %s1568_s2, 1024 }
  0x49   :  { %p1205_p4 = scmp.ne.s32.totalorder %s1568_s2, %s1204_s19  ;;  %p1208_p5 = scmp.lt.u32.totalorder %s1204_s19, %s1568_s2 }
  0x4b   :  { %p1210_p6 = pnand %p1208_p5, %p1205_p4 }
  0x4d   :  { %1213 = shalt.err (!%p1210_p6)
}
  0x4e   :  { %s1214_s0 = scalar_lea.vmem %s48_s12, 1024  ;;  %p1219_p8 = scmp.lt.s32.totalorder %s48_s12, %s48_s12 }
  0x4f   :  { %p1215_p7 = scmp.ne.s32.totalorder %s48_s12, %s1214_s0  ;;  %p1220_p9 = scmp.lt.s32.totalorder %s1214_s0, %s1214_s0 }
  0x51   :  { %p1221_p10 = por %p1220_p9, %p1219_p8 }
  0x53   :  { %p1222_p11 = pnand %p1221_p10, %p1215_p7 }
  0x55   :  { %1225 = shalt.err (!%p1222_p11)
}
  0x56   :  { %53 = dma.hbm_to_vmem [thread:$0]  %s1568_s2, 1024, %s48_s12, [#allocation6], %s1303_s15, %s1303_s15, %s1304_s16  }
  0x57   :  { %s1226_s29 = scalar_lea.hbm %s1570_s4, 1024 }
  0x58   :  { %p1227_p12 = scmp.ne.s32.totalorder %s1570_s4, %s1226_s29  ;;  %p1230_p13 = scmp.lt.u32.totalorder %s1226_s29, %s1570_s4 }
  0x5a   :  { %p1232_p0 = pnand %p1230_p13, %p1227_p12 }
  0x5c   :  { %1235 = shalt.err (!%p1232_p0)
}
  0x5d   :  { %s1236_s10 = scalar_lea.vmem %s1421_s14, 1024  ;;  %p1241_p2 = scmp.lt.s32.totalorder %s1421_s14, %s1421_s14 }
  0x5e   :  { %p1237_p1 = scmp.ne.s32.totalorder %s1421_s14, %s1236_s10  ;;  %p1242_p3 = scmp.lt.s32.totalorder %s1236_s10, %s1236_s10 }
  0x60   :  { %p1243_p4 = por %p1242_p3, %p1241_p2 }
  0x62   :  { %p1244_p5 = pnand %p1243_p4, %p1237_p1 }
  0x64   :  { %1247 = shalt.err (!%p1244_p5)
}
  0x65   :  { %77 = dma.hbm_to_vmem [thread:$0]  %s1570_s4, 1024, %s1421_s14, [#allocation9], %s1303_s15, %s1303_s15, %s1304_s16  }
  0x66   :  { %s1312_s12 = smov [#allocation13]   ;;  %s1248_s19 = scalar_lea.hbm %s1572_s6, 1024 }
  0x67   :  { %s95_s13 = sshll.u32 %s1312_s12, 4  ;;  %p1249_p6 = scmp.ne.s32.totalorder %s1572_s6, %s1248_s19  ;;  %s96_s13 = int_to_ptr.vmem [resolvable:$true] %s95_s13 }
  0x68   :  { %p1252_p7 = scmp.lt.u32.totalorder %s1248_s19, %s1572_s6 }
  0x6a   :  { %p1254_p8 = pnand %p1252_p7, %p1249_p6 }
  0x6c   :  { %1257 = shalt.err (!%p1254_p8)
}
  0x6d   :  { %s1258_s0 = scalar_lea.vmem %s96_s13, 1024  ;;  %p1263_p10 = scmp.lt.s32.totalorder %s96_s13, %s96_s13 }
  0x6e   :  { %p1259_p9 = scmp.ne.s32.totalorder %s96_s13, %s1258_s0  ;;  %p1264_p11 = scmp.lt.s32.totalorder %s1258_s0, %s1258_s0 }
  0x70   :  { %p1265_p12 = por %p1264_p11, %p1263_p10 }
  0x72   :  { %p1266_p13 = pnand %p1265_p12, %p1259_p9 }
  0x74   :  { %1269 = shalt.err (!%p1266_p13)
}
  0x75   :  { %101 = dma.hbm_to_vmem [thread:$0]  %s1572_s6, 1024, %s96_s13, [#allocation12], %s1303_s15, %s1303_s15, %s1304_s16  }
  0x76   :  { %1292 = dma.done.wait [#allocation3], 256  }
  0x77   :  { %1293 = vsyncadd [#allocation3], 4294967040 }
  0x78   :  { %1294 = dma.done.wait [#allocation6], 2048  }
  0x79   :  { %1295 = vsyncadd [#allocation6], 4294965248 }
  0x7a   :  { %1296 = dma.done.wait [#allocation9], 2048  }
  0x7b   :  { %1297 = vsyncadd [#allocation9], 4294965248 }
  0x7c   :  { %1298 = dma.done.wait [#allocation12], 2048  }
  0x7d   :  { %1299 = vsyncadd [#allocation12], 4294965248  ;;  %v1313_v0 = vmov 0.0   ;;  %vm1314_vm0 = vmmov 0   ;;  %v1068_v1 = vld [vmem:[#allocation5] sm:$0xff]   ;;  %v1069_v2 = vld [vmem:[#allocation5 + $0x8] sm:$0xff]  }
  0x7e   :  { %934 = vmatprep.subr.bf16.mxu0 %v1313_v0  ;;  %950 = vmatprep.mubr.msk.bf16.mxu0 %vm1314_vm0, %v1313_v0  ;;  %v1070_v3 = vld [vmem:[#allocation5 + $0x10] sm:$0xff]   ;;  %v1076_v4 = vld [vmem:[#allocation7] sm:$0xff]   ;;  %v1071_v5 = vld [vmem:[#allocation5 + $0x18] sm:$0xff]   ;;  %s1315_s10 = smov [#allocation14]  }
  0x7f   :  { %954 = vmatprep.subr.bf16.mxu1 %v1313_v0  ;;  %970 = vmatprep.mubr.msk.bf16.mxu1 %vm1314_vm0, %v1313_v0  ;;  %v1077_v6 = vld [vmem:[#allocation7 + $0x8] sm:$0xff]   ;;  %v1072_v7 = vld [vmem:[#allocation5 + $0x20] sm:$0xff]   ;;  %v1078_v8 = vld [vmem:[#allocation7 + $0x10] sm:$0xff]   ;;  %s811_s2 = sshll.u32 %s1315_s10, 4  ;;  %s812_s2 = int_to_ptr.vmem [resolvable:$true] %s811_s2 }
  0x80   :  { %935 = vmatpush3.bf16.msra.mxu0 %v1068_v1  ;;  %955 = vmatpush3.bf16.msra.mxu1 %v1076_v4  ;;  %v1073_v9 = vld [vmem:[#allocation5 + $0x28] sm:$0xff]   ;;  %v1079_v10 = vld [vmem:[#allocation7 + $0x18] sm:$0xff]   ;;  %v1074_v11 = vld [vmem:[#allocation5 + $0x30] sm:$0xff]   ;;  %s1270_s11 = scalar_lea.vmem %s812_s2, 256  ;;  %p1275_p1 = scmp.lt.s32.totalorder %s812_s2, %s812_s2 }
  0x81   :  { %936 = vmatprep.subr.bf16.mxu0 %v1313_v0  ;;  %956 = vmatprep.subr.bf16.mxu1 %v1313_v0  ;;  %v1080_v12 = vld [vmem:[#allocation7 + $0x20] sm:$0xff]   ;;  %v1075_v13 = vld [vmem:[#allocation5 + $0x38] sm:$0xff]   ;;  %v126_v14 = vld [vmem:[#allocation2] sm:$0xff]  ;;  %p1271_p0 = scmp.ne.s32.totalorder %s812_s2, %s1270_s11  ;;  %p1276_p2 = scmp.lt.s32.totalorder %s1270_s11, %s1270_s11 }
  0x82   :  { %v127_v15 = vld [vmem:[#allocation2 + $0x8] sm:$0xff]  ;;  %v1081_v16 = vld [vmem:[#allocation7 + $0x28] sm:$0xff]   ;;  %v1082_v18 = vld [vmem:[#allocation7 + $0x30] sm:$0xff]  }
  0x83   :  { %v145_v17 = vpack.c.bf16 %v127_v15, %v126_v14  ;;  %v1083_v19 = vld [vmem:[#allocation7 + $0x38] sm:$0xff]   ;;  %v1084_v20 = vld [vmem:[#allocation8] sm:$0xff]   ;;  %v1085_v21 = vld [vmem:[#allocation8 + $0x8] sm:$0xff]   ;;  %p1277_p3 = por %p1276_p2, %p1275_p1 }
  0x84   :  { %937 = vmatpush3.bf16.msra.mxu0 %v1069_v2  ;;  %957 = vmatpush3.bf16.msra.mxu1 %v1077_v6  ;;  %v1086_v22 = vld [vmem:[#allocation8 + $0x10] sm:$0xff]   ;;  %v1087_v23 = vld [vmem:[#allocation8 + $0x18] sm:$0xff]   ;;  %v1088_v24 = vld [vmem:[#allocation8 + $0x20] sm:$0xff]  }
  0x85   :  { %938 = vmatprep.subr.bf16.mxu0 %v1313_v0  ;;  %958 = vmatprep.subr.bf16.mxu1 %v1313_v0  ;;  %v1089_v25 = vld [vmem:[#allocation8 + $0x28] sm:$0xff]   ;;  %v826_v26 = vld [vmem:[%s1573_s7] ss:$0 sm:$0xff]  ;;  %v1091_v37 = vld [vmem:[#allocation8 + $0x38] sm:$0xff]   ;;  %p1278_p4 = pnand %p1277_p3, %p1271_p0 }
  0x86   :  { %v1090_v36 = vld [vmem:[#allocation8 + $0x30] sm:$0xff]   ;;  %v1092_v38 = vld [vmem:[#allocation10] sm:$0xff]   ;;  %v1093_v39 = vld [vmem:[#allocation10 + $0x8] sm:$0xff]  }
  0x87   :  { %v1094_v40 = vld [vmem:[#allocation10 + $0x10] sm:$0xff]   ;;  %v1095_v41 = vld [vmem:[#allocation10 + $0x18] sm:$0xff]   ;;  %v1096_v42 = vld [vmem:[#allocation10 + $0x20] sm:$0xff]  }
  0x88   :  { %939 = vmatpush3.bf16.msra.mxu0 %v1070_v3  ;;  %959 = vmatpush3.bf16.msra.mxu1 %v1078_v8  ;;  %v1097_v43 = vld [vmem:[#allocation10 + $0x28] sm:$0xff]   ;;  %v835_v44 = vld [vmem:[%s1573_s7 + $0x1] ss:$0 sm:$0xff]  ;;  %v1099_v55 = vld [vmem:[#allocation10 + $0x38] sm:$0xff]  }
  0x89   :  { %940 = vmatprep.subr.bf16.mxu0 %v1313_v0  ;;  %960 = vmatprep.subr.bf16.mxu1 %v1313_v0  ;;  %v1098_v54 = vld [vmem:[#allocation10 + $0x30] sm:$0xff]   ;;  %v1100_v56 = vld [vmem:[#allocation11] sm:$0xff]   ;;  %v1101_v57 = vld [vmem:[#allocation11 + $0x8] sm:$0xff]  }
  0x8a   :  { %v1102_v58 = vld [vmem:[#allocation11 + $0x10] sm:$0xff]   ;;  %v1103_v59 = vld [vmem:[#allocation11 + $0x18] sm:$0xff]   ;;  %v1104_v60 = vld [vmem:[#allocation11 + $0x20] sm:$0xff]  }
  0x8b   :  { %v1105_v61 = vld [vmem:[#allocation11 + $0x28] sm:$0xff]   ;;  %v844_v62 = vld [vmem:[%s1573_s7 + $0x2] ss:$0 sm:$0xff]  ;;  %v1111_v14 = vld [vmem:[#allocation13 + $0x18] sm:$0xff]  }
  0x8c   :  { %941 = vmatpush3.bf16.msra.mxu0 %v1071_v5  ;;  %961 = vmatpush3.bf16.msra.mxu1 %v1079_v10  ;;  %v1107_v10 = vld [vmem:[#allocation11 + $0x38] sm:$0xff]   ;;  %v1112_v15 = vld [vmem:[#allocation13 + $0x20] sm:$0xff]  }
  0x8d   :  { %942 = vmatprep.subr.bf16.mxu0 %v1313_v0  ;;  %962 = vmatprep.subr.bf16.mxu1 %v1313_v0 }
  0x90   :  { %943 = vmatpush3.bf16.msra.mxu0 %v1072_v7  ;;  %963 = vmatpush3.bf16.msra.mxu1 %v1080_v12  ;;  %v1109_v12 = vld [vmem:[#allocation13 + $0x8] sm:$0xff]  }
  0x91   :  { %944 = vmatprep.subr.bf16.mxu0 %v1313_v0  ;;  %964 = vmatprep.subr.bf16.mxu1 %v1313_v0 }
  0x94   :  { %945 = vmatpush3.bf16.msra.mxu0 %v1073_v9  ;;  %965 = vmatpush3.bf16.msra.mxu1 %v1081_v16  ;;  %v1106_v9 = vld [vmem:[#allocation11 + $0x30] sm:$0xff]   ;;  %v1113_v16 = vld [vmem:[#allocation13 + $0x28] sm:$0xff]  }
  0x95   :  { %946 = vmatprep.subr.bf16.mxu0 %v1313_v0  ;;  %966 = vmatprep.subr.bf16.mxu1 %v1313_v0 }
  0x98   :  { %947 = vmatpush3.bf16.msra.mxu0 %v1074_v11  ;;  %967 = vmatpush3.bf16.msra.mxu1 %v1082_v18  ;;  %v1108_v11 = vld [vmem:[#allocation13] sm:$0xff]  }
  0x99   :  { %948 = vmatprep.subr.bf16.mxu0 %v1313_v0  ;;  %968 = vmatprep.subr.bf16.mxu1 %v1313_v0 }
  0x9c   :  { %949 = vmatpush3.bf16.msra.mxu0 %v1075_v13  ;;  %969 = vmatpush3.bf16.msra.mxu1 %v1083_v19  ;;  %v1110_v13 = vld [vmem:[#allocation13 + $0x10] sm:$0xff]  }
  0x9d   :  { %974 = vmatprep.subr.bf16.mxu0 %v1313_v0  ;;  %994 = vmatprep.subr.bf16.mxu1 %v1313_v0 }
  0x9f   :  { %951 = vmatmul.mubr.bf16.vlgmr.msra.gmra.mrb[0].mxu0 %v145_v17  ;;  %v853_v17 = vld [vmem:[%s1573_s7 + $0x3] ss:$0 sm:$0xff] }
  0xa0   :  { %990 = vmatprep.mubr.msk.bf16.mxu0 %vm1314_vm0, %v1313_v0  ;;  %975 = vmatpush3.bf16.msra.mxu0 %v1084_v20 }
  0xa1   :  { %976 = vmatprep.subr.bf16.mxu0 %v1313_v0 }
  0xa4   :  { %977 = vmatpush3.bf16.msra.mxu0 %v1085_v21 }
  0xa5   :  { %978 = vmatprep.subr.bf16.mxu0 %v1313_v0 }
  0xa8   :  { %979 = vmatpush3.bf16.msra.mxu0 %v1086_v22 }
  0xa9   :  { %980 = vmatprep.subr.bf16.mxu0 %v1313_v0 }
  0xac   :  { %981 = vmatpush3.bf16.msra.mxu0 %v1087_v23 }
  0xad   :  { %982 = vmatprep.subr.bf16.mxu0 %v1313_v0 }
  0xb0   :  { %983 = vmatpush3.bf16.msra.mxu0 %v1088_v24 }
  0xb1   :  { %984 = vmatprep.subr.bf16.mxu0 %v1313_v0 }
  0xb4   :  { %985 = vmatpush3.bf16.msra.mxu0 %v1089_v25 }
  0xb5   :  { %986 = vmatprep.subr.bf16.mxu0 %v1313_v0 }
  0xb8   :  { %987 = vmatpush3.bf16.msra.mxu0 %v1090_v36 }
  0xb9   :  { %988 = vmatprep.subr.bf16.mxu0 %v1313_v0 }
  0xbc   :  { %989 = vmatpush3.bf16.msra.mxu0 %v1091_v37 }
  0xbd   :  { %1014 = vmatprep.subr.bf16.mxu0 %v1313_v0 }
 0x172   :  { %v232_v27 = vpop.f32.mrb[0].mxu0 }
 0x173   :  { %v233_v28 = vadd.f32 %v826_v26, %v232_v27  ;;  %v952_v29 = vpop.f32.mrb[1].mxu0  ;;  %v1114_v27 = vld [vmem:[#allocation13 + $0x30] sm:$0xff]  }
 0x174   :  { %v235_v30 = vpop.f32.mrb[2].mxu0  ;;  %v862_v29 = vld [vmem:[%s1573_s7 + $0x4] ss:$0 sm:$0xff] }
 0x175   :  { %v236_v31 = vadd.f32 %v826_v26, %v235_v30  ;;  %v953_v32 = vpop.f32.mrb[3].mxu0  ;;  %v239_v33 = vmax.f32 %v233_v28, 0.0  ;;  %v1115_v28 = vld [vmem:[#allocation13 + $0x38] sm:$0xff]  }
 0x177   :  { %v240_v34 = vmax.f32 %v236_v31, 0.0 }
 0x179   :  { %v258_v35 = vpack.c.bf16 %v240_v34, %v239_v33 }
 0x17b   :  { %971 = vmatmul.mubr.bf16.vlgmr.msra.gmra.mrb[0].mxu1 %v258_v35 }
 0x17c   :  { %1010 = vmatprep.mubr.msk.bf16.mxu1 %vm1314_vm0, %v1313_v0  ;;  %995 = vmatpush3.bf16.msra.mxu1 %v1092_v38 }
 0x17d   :  { %996 = vmatprep.subr.bf16.mxu1 %v1313_v0 }
 0x180   :  { %997 = vmatpush3.bf16.msra.mxu1 %v1093_v39 }
 0x181   :  { %998 = vmatprep.subr.bf16.mxu1 %v1313_v0 }
 0x184   :  { %999 = vmatpush3.bf16.msra.mxu1 %v1094_v40 }
 0x185   :  { %1000 = vmatprep.subr.bf16.mxu1 %v1313_v0 }
 0x188   :  { %1001 = vmatpush3.bf16.msra.mxu1 %v1095_v41 }
 0x189   :  { %1002 = vmatprep.subr.bf16.mxu1 %v1313_v0 }
 0x18c   :  { %1003 = vmatpush3.bf16.msra.mxu1 %v1096_v42 }
 0x18d   :  { %1004 = vmatprep.subr.bf16.mxu1 %v1313_v0 }
 0x190   :  { %1005 = vmatpush3.bf16.msra.mxu1 %v1097_v43 }
 0x191   :  { %1006 = vmatprep.subr.bf16.mxu1 %v1313_v0 }
 0x194   :  { %1007 = vmatpush3.bf16.msra.mxu1 %v1098_v54 }
 0x195   :  { %1008 = vmatprep.subr.bf16.mxu1 %v1313_v0 }
 0x198   :  { %1009 = vmatpush3.bf16.msra.mxu1 %v1099_v55 }
 0x199   :  { %1034 = vmatprep.subr.bf16.mxu1 %v1313_v0 }
 0x24e   :  { %v345_v45 = vpop.f32.mrb[0].mxu1 }
 0x24f   :  { %v346_v46 = vadd.f32 %v835_v44, %v345_v45  ;;  %v972_v47 = vpop.f32.mrb[1].mxu1 }
 0x250   :  { %v348_v48 = vpop.f32.mrb[2].mxu1 }
 0x251   :  { %v349_v49 = vadd.f32 %v835_v44, %v348_v48  ;;  %v973_v50 = vpop.f32.mrb[3].mxu1  ;;  %v352_v51 = vmax.f32 %v346_v46, 0.0 }
 0x253   :  { %v353_v52 = vmax.f32 %v349_v49, 0.0 }
 0x255   :  { %v371_v53 = vpack.c.bf16 %v353_v52, %v352_v51 }
 0x257   :  { %991 = vmatmul.mubr.bf16.vlgmr.msra.gmra.mrb[4].mxu0 %v371_v53 }
 0x258   :  { %1030 = vmatprep.mubr.msk.bf16.mxu0 %vm1314_vm0, %v1313_v0  ;;  %1015 = vmatpush3.bf16.msra.mxu0 %v1100_v56 }
 0x259   :  { %1016 = vmatprep.subr.bf16.mxu0 %v1313_v0 }
 0x25c   :  { %1017 = vmatpush3.bf16.msra.mxu0 %v1101_v57 }
 0x25d   :  { %1018 = vmatprep.subr.bf16.mxu0 %v1313_v0 }
 0x260   :  { %1019 = vmatpush3.bf16.msra.mxu0 %v1102_v58 }
 0x261   :  { %1020 = vmatprep.subr.bf16.mxu0 %v1313_v0 }
 0x264   :  { %1021 = vmatpush3.bf16.msra.mxu0 %v1103_v59 }
 0x265   :  { %1022 = vmatprep.subr.bf16.mxu0 %v1313_v0 }
 0x268   :  { %1023 = vmatpush3.bf16.msra.mxu0 %v1104_v60 }
 0x269   :  { %1024 = vmatprep.subr.bf16.mxu0 %v1313_v0 }
 0x26c   :  { %1025 = vmatpush3.bf16.msra.mxu0 %v1105_v61 }
 0x26d   :  { %1026 = vmatprep.subr.bf16.mxu0 %v1313_v0 }
 0x270   :  { %1027 = vmatpush3.bf16.msra.mxu0 %v1106_v9 }
 0x271   :  { %1028 = vmatprep.subr.bf16.mxu0 %v1313_v0 }
 0x274   :  { %1029 = vmatpush3.bf16.msra.mxu0 %v1107_v10 }
 0x32a   :  { %v458_v63 = vpop.f32.mrb[4].mxu0 }
 0x32b   :  { %v459_v1 = vadd.f32 %v844_v62, %v458_v63  ;;  %v992_v2 = vpop.f32.mrb[5].mxu0 }
 0x32c   :  { %v461_v3 = vpop.f32.mrb[6].mxu0 }
 0x32d   :  { %v462_v4 = vadd.f32 %v844_v62, %v461_v3  ;;  %v993_v5 = vpop.f32.mrb[7].mxu0  ;;  %v465_v6 = vmax.f32 %v459_v1, 0.0 }
 0x32f   :  { %v466_v7 = vmax.f32 %v462_v4, 0.0 }
 0x331   :  { %v484_v8 = vpack.c.bf16 %v466_v7, %v465_v6 }
 0x333   :  { %1011 = vmatmul.mubr.bf16.vlgmr.msra.gmra.mrb[4].mxu1 %v484_v8 }
 0x334   :  { %1050 = vmatprep.mubr.msk.bf16.mxu1 %vm1314_vm0, %v1313_v0  ;;  %1035 = vmatpush3.bf16.msra.mxu1 %v1108_v11 }
 0x335   :  { %1036 = vmatprep.subr.bf16.mxu1 %v1313_v0 }
 0x338   :  { %1037 = vmatpush3.bf16.msra.mxu1 %v1109_v12 }
 0x339   :  { %1038 = vmatprep.subr.bf16.mxu1 %v1313_v0 }
 0x33c   :  { %1039 = vmatpush3.bf16.msra.mxu1 %v1110_v13 }
 0x33d   :  { %1040 = vmatprep.subr.bf16.mxu1 %v1313_v0 }
 0x340   :  { %1041 = vmatpush3.bf16.msra.mxu1 %v1111_v14 }
 0x341   :  { %1042 = vmatprep.subr.bf16.mxu1 %v1313_v0 }
 0x344   :  { %1043 = vmatpush3.bf16.msra.mxu1 %v1112_v15 }
 0x345   :  { %1044 = vmatprep.subr.bf16.mxu1 %v1313_v0 }
 0x348   :  { %1045 = vmatpush3.bf16.msra.mxu1 %v1113_v16 }
 0x349   :  { %1046 = vmatprep.subr.bf16.mxu1 %v1313_v0 }
 0x34c   :  { %1047 = vmatpush3.bf16.msra.mxu1 %v1114_v27 }
 0x34d   :  { %1048 = vmatprep.subr.bf16.mxu1 %v1313_v0  ;;  %v871_v0 = vld [vmem:[%s1573_s7 + $0x5] ss:$0 sm:$0xff] }
 0x350   :  { %1049 = vmatpush3.bf16.msra.mxu1 %v1115_v28 }
 0x406   :  { %v571_v18 = vpop.f32.mrb[4].mxu1 }
 0x407   :  { %v572_v19 = vadd.f32 %v853_v17, %v571_v18  ;;  %v1012_v20 = vpop.f32.mrb[5].mxu1 }
 0x408   :  { %v574_v21 = vpop.f32.mrb[6].mxu1 }
 0x409   :  { %v575_v22 = vadd.f32 %v853_v17, %v574_v21  ;;  %v1013_v23 = vpop.f32.mrb[7].mxu1  ;;  %v578_v24 = vmax.f32 %v572_v19, 0.0 }
 0x40b   :  { %v579_v25 = vmax.f32 %v575_v22, 0.0 }
 0x40d   :  { %v597_v26 = vpack.c.bf16 %v579_v25, %v578_v24 }
 0x40f   :  { %1031 = vmatmul.mubr.bf16.vlgmr.msra.gmra.mrb[8].mxu0 %v597_v26 }
 0x4e2   :  { %v684_v30 = vpop.f32.mrb[8].mxu0 }
 0x4e3   :  { %v685_v31 = vadd.f32 %v862_v29, %v684_v30  ;;  %v1032_v32 = vpop.f32.mrb[9].mxu0 }
 0x4e4   :  { %v687_v33 = vpop.f32.mrb[10].mxu0 }
 0x4e5   :  { %v688_v34 = vadd.f32 %v862_v29, %v687_v33  ;;  %v1033_v35 = vpop.f32.mrb[11].mxu0  ;;  %v691_v36 = vmax.f32 %v685_v31, 0.0 }
 0x4e7   :  { %v692_v37 = vmax.f32 %v688_v34, 0.0 }
 0x4e9   :  { %v710_v38 = vpack.c.bf16 %v692_v37, %v691_v36 }
 0x4eb   :  { %1051 = vmatmul.mubr.bf16.vlgmr.msra.gmra.mrb[8].mxu1 %v710_v38 }
 0x5be   :  { %v797_v39 = vpop.f32.mrb[8].mxu1 }
 0x5bf   :  { %v798_v40 = vadd.f32 %v871_v0, %v797_v39  ;;  %v1052_v41 = vpop.f32.mrb[9].mxu1 }
 0x5c0   :  { %v800_v42 = vpop.f32.mrb[10].mxu1 }
 0x5c1   :  { %804 = vst [vmem:[#allocation14] sm:$0xff] %v798_v40  ;;  %v801_v43 = vadd.f32 %v871_v0, %v800_v42  ;;  %v1053_v44 = vpop.f32.mrb[11].mxu1 }
 0x5c3   :  { %805 = vst [vmem:[#allocation14 + $0x8] sm:$0xff] %v801_v43 }
 0x5c4   :  { %1281 = shalt.err (!%p1278_p4)
}
 0x5c5   :  { %s1282_s13 = scalar_lea.hbm %s1574_s8, 256 }
 0x5c6   :  { %p1283_p5 = scmp.ne.s32.totalorder %s1574_s8, %s1282_s13  ;;  %p1286_p6 = scmp.lt.u32.totalorder %s1282_s13, %s1574_s8 }
 0x5c8   :  { %p1288_p7 = pnand %p1286_p6, %p1283_p5 }
 0x5ca   :  { %1291 = shalt.err (!%p1288_p7)
}
 0x5cb   :  { %817 = dma.vmem_to_hbm [thread:$0]  %s812_s2, 256, %s1574_s8, [#allocation4], %s1308_s5, %s1308_s5, %s1309_s22  }
 0x5cc   :  { %1300 = dma.done.wait [#allocation4], 256  }
 0x5cd   :  { %1301 = vsyncadd [#allocation4], 4294967040 }
 0x5ce   :  { %821 = vsyncpa [#allocation3], 1 }
 0x5cf   :  { %822 = vsyncpa [#allocation6], 1 }
 0x5d0   :  { %823 = vsyncpa [#allocation9], 1 }
 0x5d1   :  { %824 = vsyncpa [#allocation12], 1 }
 0x5d2   :  { %825 = vsyncpa [#allocation4], 1 }

// kernel: tpu_custom_call.1
= control target key start
LH: loop header
LB: loop body
LE: loop exit
PB: predicated region body
PF: predicated region fallthrough
CT: control target
= control target key end

     0   :  { %13 = vsyncpa [#allocation3], 0  ;;  %s1566_s0 = inlined_call_operand.hbm [shape: f32[16,128], index: 0, kind: input, shape index: {}]   ;;  %s1567_s1 = inlined_call_operand.hbm [shape: bf16[128,128], index: 1, kind: input, shape index: {}]   ;;  %s1568_s2 = inlined_call_operand.hbm [shape: bf16[128,128], index: 2, kind: input, shape index: {}]   ;;  %s1569_s3 = inlined_call_operand.hbm [shape: bf16[128,128], index: 3, kind: input, shape index: {}]   ;;  %s1570_s4 = inlined_call_operand.hbm [shape: bf16[128,128], index: 4, kind: input, shape index: {}]   ;;  %s1571_s5 = inlined_call_operand.hbm [shape: bf16[128,128], index: 5, kind: input, shape index: {}]   ;;  %s1572_s6 = inlined_call_operand.hbm [shape: bf16[128,128], index: 6, kind: input, shape index: {}]   ;;  %s1573_s7 = inlined_call_operand.vmem [shape: f32[6,128], index: 7, kind: input, shape index: {}]   ;;  %s1574_s8 = inlined_call_operand.hbm [shape: f32[16,128], index: 8, kind: output, shape index: {}]  }
   0x1   :  { %14 = vsyncpa [#allocation6], 0 }
   0x2   :  { %15 = vsyncpa [#allocation9], 0 }
   0x3   :  { %16 = vsyncpa [#allocation12], 0 }
   0x4   :  { %17 = vsyncpa [#allocation4], 0  ;;  %s1302_s27 = smov [#allocation5]   ;;  %s1116_s9 = scalar_lea.hbm %s1567_s1, 1024 }
   0x5   :  { %s35_s28 = sshll.u32 %s1302_s27, 4  ;;  %p1117_p0 = scmp.ne.s32.totalorder %s1567_s1, %s1116_s9  ;;  %s36_s28 = int_to_ptr.vmem [resolvable:$true] %s35_s28 }
   0x6   :  { %p1120_p1 = scmp.lt.u32.totalorder %s1116_s9, %s1567_s1 }
   0x8   :  { %p1122_p2 = pnand %p1120_p1, %p1117_p0 }
   0xa   :  { %1125 = shalt.err (!%p1122_p2)
}
   0xb   :  { %s1126_s14 = scalar_lea.vmem %s36_s28, 1024  ;;  %p1131_p4 = scmp.lt.s32.totalorder %s36_s28, %s36_s28 }
   0xc   :  { %p1127_p3 = scmp.ne.s32.totalorder %s36_s28, %s1126_s14  ;;  %p1132_p5 = scmp.lt.s32.totalorder %s1126_s14, %s1126_s14 }
   0xe   :  { %p1133_p6 = por %p1132_p5, %p1131_p4 }
  0x10   :  { %p1134_p7 = pnand %p1133_p6, %p1127_p3 }
  0x12   :  { %1137 = shalt.err (!%p1134_p7)
}
  0x13   :  { %s1303_s15 = smov 64   ;;  %s1304_s16 = smov 4  }
  0x14   :  { %41 = dma.hbm_to_vmem [thread:$0]  %s1567_s1, 1024, %s36_s28, [#allocation6], %s1303_s15, %s1303_s15, %s1304_s16  }
  0x15   :  { %s1305_s19 = smov [#allocation8]   ;;  %s1306_s21 = smov [#allocation11]  }
  0x16   :  { %s59_s20 = sshll.u32 %s1305_s19, 4  ;;  %s83_s22 = sshll.u32 %s1306_s21, 4  ;;  %s60_s20 = int_to_ptr.vmem [resolvable:$true] %s59_s20  ;;  %s84_s22 = int_to_ptr.vmem [resolvable:$true] %s83_s22 }
  0x17   :  { %s1138_s25 = scalar_lea.hbm %s1569_s3, 1024 }
  0x18   :  { %p1139_p8 = scmp.ne.s32.totalorder %s1569_s3, %s1138_s25  ;;  %p1142_p9 = scmp.lt.u32.totalorder %s1138_s25, %s1569_s3 }
  0x1a   :  { %p1144_p10 = pnand %p1142_p9, %p1139_p8 }
  0x1c   :  { %1147 = shalt.err (!%p1144_p10)
}
  0x1d   :  { %s1148_s1 = scalar_lea.vmem %s60_s20, 1024  ;;  %p1153_p12 = scmp.lt.s32.totalorder %s60_s20, %s60_s20 }
  0x1e   :  { %p1149_p11 = scmp.ne.s32.totalorder %s60_s20, %s1148_s1  ;;  %p1154_p13 = scmp.lt.s32.totalorder %s1148_s1, %s1148_s1 }
  0x20   :  { %p1155_p0 = por %p1154_p13, %p1153_p12 }
  0x22   :  { %p1156_p1 = pnand %p1155_p0, %p1149_p11 }
  0x24   :  { %1159 = shalt.err (!%p1156_p1)
}
  0x25   :  { %65 = dma.hbm_to_vmem [thread:$0]  %s1569_s3, 1024, %s60_s20, [#allocation9], %s1303_s15, %s1303_s15, %s1304_s16  }
  0x26   :  { %s1160_s12 = scalar_lea.hbm %s1571_s5, 1024 }
  0x27   :  { %p1161_p2 = scmp.ne.s32.totalorder %s1571_s5, %s1160_s12  ;;  %p1164_p3 = scmp.lt.u32.totalorder %s1160_s12, %s1571_s5 }
  0x29   :  { %p1166_p4 = pnand %p1164_p3, %p1161_p2 }
  0x2b   :  { %1169 = shalt.err (!%p1166_p4)
}
  0x2c   :  { %s1170_s19 = scalar_lea.vmem %s84_s22, 1024  ;;  %p1175_p6 = scmp.lt.s32.totalorder %s84_s22, %s84_s22 }
  0x2d   :  { %p1171_p5 = scmp.ne.s32.totalorder %s84_s22, %s1170_s19  ;;  %p1176_p7 = scmp.lt.s32.totalorder %s1170_s19, %s1170_s19 }
  0x2f   :  { %p1177_p8 = por %p1176_p7, %p1175_p6 }
  0x31   :  { %p1178_p9 = pnand %p1177_p8, %p1171_p5 }
  0x33   :  { %1181 = shalt.err (!%p1178_p9)
}
  0x34   :  { %89 = dma.hbm_to_vmem [thread:$0]  %s1571_s5, 1024, %s84_s22, [#allocation12], %s1303_s15, %s1303_s15, %s1304_s16  }
  0x35   :  { %s1307_s21 = smov [#allocation2]   ;;  %s1182_s26 = scalar_lea.hbm %s1566_s0, 256 }
  0x36   :  { %s23_s23 = sshll.u32 %s1307_s21, 4  ;;  %p1183_p10 = scmp.ne.s32.totalorder %s1566_s0, %s1182_s26  ;;  %s24_s23 = int_to_ptr.vmem [resolvable:$true] %s23_s23 }
  0x37   :  { %p1186_p11 = scmp.lt.u32.totalorder %s1182_s26, %s1566_s0 }
  0x39   :  { %p1188_p12 = pnand %p1186_p11, %p1183_p10 }
  0x3b   :  { %1191 = shalt.err (!%p1188_p12)
}
  0x3c   :  { %s1192_s28 = scalar_lea.vmem %s24_s23, 256  ;;  %p1197_p0 = scmp.lt.s32.totalorder %s24_s23, %s24_s23 }
  0x3d   :  { %p1193_p13 = scmp.ne.s32.totalorder %s24_s23, %s1192_s28  ;;  %p1198_p1 = scmp.lt.s32.totalorder %s1192_s28, %s1192_s28 }
  0x3f   :  { %p1199_p2 = por %p1198_p1, %p1197_p0 }
  0x41   :  { %p1200_p3 = pnand %p1199_p2, %p1193_p13 }
  0x43   :  { %1203 = shalt.err (!%p1200_p3)
}
  0x44   :  { %s1308_s5 = smov 128   ;;  %s1309_s22 = smov 8  }
  0x45   :  { %29 = dma.hbm_to_vmem [thread:$0]  %s1566_s0, 256, %s24_s23, [#allocation3], %s1308_s5, %s1308_s5, %s1309_s22  }
  0x46   :  { %s1310_s11 = smov [#allocation7]   ;;  %s1311_s13 = smov [#allocation10]  }
  0x47   :  { %s47_s12 = sshll.u32 %s1310_s11, 4  ;;  %s71_s14 = sshll.u32 %s1311_s13, 4  ;;  %s48_s12 = int_to_ptr.vmem [resolvable:$true] %s47_s12  ;;  %s1421_s14 = int_to_ptr.vmem [resolvable:$true] %s71_s14 }
  0x48   :  { %s1204_s19 = scalar_lea.hbm %s1568_s2, 1024 }
  0x49   :  { %p1205_p4 = scmp.ne.s32.totalorder %s1568_s2, %s1204_s19  ;;  %p1208_p5 = scmp.lt.u32.totalorder %s1204_s19, %s1568_s2 }
  0x4b   :  { %p1210_p6 = pnand %p1208_p5, %p1205_p4 }
  0x4d   :  { %1213 = shalt.err (!%p1210_p6)
}
  0x4e   :  { %s1214_s0 = scalar_lea.vmem %s48_s12, 1024  ;;  %p1219_p8 = scmp.lt.s32.totalorder %s48_s12, %s48_s12 }
  0x4f   :  { %p1215_p7 = scmp.ne.s32.totalorder %s48_s12, %s1214_s0  ;;  %p1220_p9 = scmp.lt.s32.totalorder %s1214_s0, %s1214_s0 }
  0x51   :  { %p1221_p10 = por %p1220_p9, %p1219_p8 }
  0x53   :  { %p1222_p11 = pnand %p1221_p10, %p1215_p7 }
  0x55   :  { %1225 = shalt.err (!%p1222_p11)
}
  0x56   :  { %53 = dma.hbm_to_vmem [thread:$0]  %s1568_s2, 1024, %s48_s12, [#allocation6], %s1303_s15, %s1303_s15, %s1304_s16  }
  0x57   :  { %s1226_s29 = scalar_lea.hbm %s1570_s4, 1024 }
  0x58   :  { %p1227_p12 = scmp.ne.s32.totalorder %s1570_s4, %s1226_s29  ;;  %p1230_p13 = scmp.lt.u32.totalorder %s1226_s29, %s1570_s4 }
  0x5a   :  { %p1232_p0 = pnand %p1230_p13, %p1227_p12 }
  0x5c   :  { %1235 = shalt.err (!%p1232_p0)
}
  0x5d   :  { %s1236_s10 = scalar_lea.vmem %s1421_s14, 1024  ;;  %p1241_p2 = scmp.lt.s32.totalorder %s1421_s14, %s1421_s14 }
  0x5e   :  { %p1237_p1 = scmp.ne.s32.totalorder %s1421_s14, %s1236_s10  ;;  %p1242_p3 = scmp.lt.s32.totalorder %s1236_s10, %s1236_s10 }
  0x60   :  { %p1243_p4 = por %p1242_p3, %p1241_p2 }
  0x62   :  { %p1244_p5 = pnand %p1243_p4, %p1237_p1 }
  0x64   :  { %1247 = shalt.err (!%p1244_p5)
}
  0x65   :  { %77 = dma.hbm_to_vmem [thread:$0]  %s1570_s4, 1024, %s1421_s14, [#allocation9], %s1303_s15, %s1303_s15, %s1304_s16  }
  0x66   :  { %s1312_s12 = smov [#allocation13]   ;;  %s1248_s19 = scalar_lea.hbm %s1572_s6, 1024 }
  0x67   :  { %s95_s13 = sshll.u32 %s1312_s12, 4  ;;  %p1249_p6 = scmp.ne.s32.totalorder %s1572_s6, %s1248_s19  ;;  %s96_s13 = int_to_ptr.vmem [resolvable:$true] %s95_s13 }
  0x68   :  { %p1252_p7 = scmp.lt.u32.totalorder %s1248_s19, %s1572_s6 }
  0x6a   :  { %p1254_p8 = pnand %p1252_p7, %p1249_p6 }
  0x6c   :  { %1257 = shalt.err (!%p1254_p8)
}
  0x6d   :  { %s1258_s0 = scalar_lea.vmem %s96_s13, 1024  ;;  %p1263_p10 = scmp.lt.s32.totalorder %s96_s13, %s96_s13 }
  0x6e   :  { %p1259_p9 = scmp.ne.s32.totalorder %s96_s13, %s1258_s0  ;;  %p1264_p11 = scmp.lt.s32.totalorder %s1258_s0, %s1258_s0 }
  0x70   :  { %p1265_p12 = por %p1264_p11, %p1263_p10 }
  0x72   :  { %p1266_p13 = pnand %p1265_p12, %p1259_p9 }
  0x74   :  { %1269 = shalt.err (!%p1266_p13)
}
  0x75   :  { %101 = dma.hbm_to_vmem [thread:$0]  %s1572_s6, 1024, %s96_s13, [#allocation12], %s1303_s15, %s1303_s15, %s1304_s16  }
  0x76   :  { %1292 = dma.done.wait [#allocation3], 256  }
  0x77   :  { %1293 = vsyncadd [#allocation3], 4294967040 }
  0x78   :  { %1294 = dma.done.wait [#allocation6], 2048  }
  0x79   :  { %1295 = vsyncadd [#allocation6], 4294965248 }
  0x7a   :  { %1296 = dma.done.wait [#allocation9], 2048  }
  0x7b   :  { %1297 = vsyncadd [#allocation9], 4294965248 }
  0x7c   :  { %1298 = dma.done.wait [#allocation12], 2048  }
  0x7d   :  { %1299 = vsyncadd [#allocation12], 4294965248  ;;  %v1313_v0 = vmov 0.0   ;;  %vm1314_vm0 = vmmov 0   ;;  %v1068_v1 = vld [vmem:[#allocation5] sm:$0xff]   ;;  %v1069_v2 = vld [vmem:[#allocation5 + $0x8] sm:$0xff]  }
  0x7e   :  { %934 = vmatprep.subr.bf16.mxu0 %v1313_v0  ;;  %950 = vmatprep.mubr.msk.bf16.mxu0 %vm1314_vm0, %v1313_v0  ;;  %v1070_v3 = vld [vmem:[#allocation5 + $0x10] sm:$0xff]   ;;  %v1076_v4 = vld [vmem:[#allocation7] sm:$0xff]   ;;  %v1071_v5 = vld [vmem:[#allocation5 + $0x18] sm:$0xff]   ;;  %s1315_s10 = smov [#allocation14]  }
  0x7f   :  { %954 = vmatprep.subr.bf16.mxu1 %v1313_v0  ;;  %970 = vmatprep.mubr.msk.bf16.mxu1 %vm1314_vm0, %v1313_v0  ;;  %v1077_v6 = vld [vmem:[#allocation7 + $0x8] sm:$0xff]   ;;  %v1072_v7 = vld [vmem:[#allocation5 + $0x20] sm:$0xff]   ;;  %v1078_v8 = vld [vmem:[#allocation7 + $0x10] sm:$0xff]   ;;  %s811_s2 = sshll.u32 %s1315_s10, 4  ;;  %s812_s2 = int_to_ptr.vmem [resolvable:$true] %s811_s2 }
  0x80   :  { %935 = vmatpush3.bf16.msra.mxu0 %v1068_v1  ;;  %955 = vmatpush3.bf16.msra.mxu1 %v1076_v4  ;;  %v1073_v9 = vld [vmem:[#allocation5 + $0x28] sm:$0xff]   ;;  %v1079_v10 = vld [vmem:[#allocation7 + $0x18] sm:$0xff]   ;;  %v1074_v11 = vld [vmem:[#allocation5 + $0x30] sm:$0xff]   ;;  %s1270_s11 = scalar_lea.vmem %s812_s2, 256  ;;  %p1275_p1 = scmp.lt.s32.totalorder %s812_s2, %s812_s2 }
  0x81   :  { %936 = vmatprep.subr.bf16.mxu0 %v1313_v0  ;;  %956 = vmatprep.subr.bf16.mxu1 %v1313_v0  ;;  %v1080_v12 = vld [vmem:[#allocation7 + $0x20] sm:$0xff]   ;;  %v1075_v13 = vld [vmem:[#allocation5 + $0x38] sm:$0xff]   ;;  %v126_v14 = vld [vmem:[#allocation2] sm:$0xff]  ;;  %p1271_p0 = scmp.ne.s32.totalorder %s812_s2, %s1270_s11  ;;  %p1276_p2 = scmp.lt.s32.totalorder %s1270_s11, %s1270_s11 }
  0x82   :  { %v127_v15 = vld [vmem:[#allocation2 + $0x8] sm:$0xff]  ;;  %v1081_v16 = vld [vmem:[#allocation7 + $0x28] sm:$0xff]   ;;  %v1082_v18 = vld [vmem:[#allocation7 + $0x30] sm:$0xff]  }
  0x83   :  { %v145_v17 = vpack.c.bf16 %v127_v15, %v126_v14  ;;  %v1083_v19 = vld [vmem:[#allocation7 + $0x38] sm:$0xff]   ;;  %v1084_v20 = vld [vmem:[#allocation8] sm:$0xff]   ;;  %v1085_v21 = vld [vmem:[#allocation8 + $0x8] sm:$0xff]   ;;  %p1277_p3 = por %p1276_p2, %p1275_p1 }
  0x84   :  { %937 = vmatpush3.bf16.msra.mxu0 %v1069_v2  ;;  %957 = vmatpush3.bf16.msra.mxu1 %v1077_v6  ;;  %v1086_v22 = vld [vmem:[#allocation8 + $0x10] sm:$0xff]   ;;  %v1087_v23 = vld [vmem:[#allocation8 + $0x18] sm:$0xff]   ;;  %v1088_v24 = vld [vmem:[#allocation8 + $0x20] sm:$0xff]  }
  0x85   :  { %938 = vmatprep.subr.bf16.mxu0 %v1313_v0  ;;  %958 = vmatprep.subr.bf16.mxu1 %v1313_v0  ;;  %v1089_v25 = vld [vmem:[#allocation8 + $0x28] sm:$0xff]   ;;  %v826_v26 = vld [vmem:[%s1573_s7] ss:$0 sm:$0xff]  ;;  %v1091_v37 = vld [vmem:[#allocation8 + $0x38] sm:$0xff]   ;;  %p1278_p4 = pnand %p1277_p3, %p1271_p0 }
  0x86   :  { %v1090_v36 = vld [vmem:[#allocation8 + $0x30] sm:$0xff]   ;;  %v1092_v38 = vld [vmem:[#allocation10] sm:$0xff]   ;;  %v1093_v39 = vld [vmem:[#allocation10 + $0x8] sm:$0xff]  }
  0x87   :  { %v1094_v40 = vld [vmem:[#allocation10 + $0x10] sm:$0xff]   ;;  %v1095_v41 = vld [vmem:[#allocation10 + $0x18] sm:$0xff]   ;;  %v1096_v42 = vld [vmem:[#allocation10 + $0x20] sm:$0xff]  }
  0x88   :  { %939 = vmatpush3.bf16.msra.mxu0 %v1070_v3  ;;  %959 = vmatpush3.bf16.msra.mxu1 %v1078_v8  ;;  %v1097_v43 = vld [vmem:[#allocation10 + $0x28] sm:$0xff]   ;;  %v835_v44 = vld [vmem:[%s1573_s7 + $0x1] ss:$0 sm:$0xff]  ;;  %v1099_v55 = vld [vmem:[#allocation10 + $0x38] sm:$0xff]  }
  0x89   :  { %940 = vmatprep.subr.bf16.mxu0 %v1313_v0  ;;  %960 = vmatprep.subr.bf16.mxu1 %v1313_v0  ;;  %v1098_v54 = vld [vmem:[#allocation10 + $0x30] sm:$0xff]   ;;  %v1100_v56 = vld [vmem:[#allocation11] sm:$0xff]   ;;  %v1101_v57 = vld [vmem:[#allocation11 + $0x8] sm:$0xff]  }
  0x8a   :  { %v1102_v58 = vld [vmem:[#allocation11 + $0x10] sm:$0xff]   ;;  %v1103_v59 = vld [vmem:[#allocation11 + $0x18] sm:$0xff]   ;;  %v1104_v60 = vld [vmem:[#allocation11 + $0x20] sm:$0xff]  }
  0x8b   :  { %v1105_v61 = vld [vmem:[#allocation11 + $0x28] sm:$0xff]   ;;  %v844_v62 = vld [vmem:[%s1573_s7 + $0x2] ss:$0 sm:$0xff]  ;;  %v1111_v14 = vld [vmem:[#allocation13 + $0x18] sm:$0xff]  }
  0x8c   :  { %941 = vmatpush3.bf16.msra.mxu0 %v1071_v5  ;;  %961 = vmatpush3.bf16.msra.mxu1 %v1079_v10  ;;  %v1107_v10 = vld [vmem:[#allocation11 + $0x38] sm:$0xff]   ;;  %v1112_v15 = vld [vmem:[#allocation13 + $0x20] sm:$0xff]  }
  0x8d   :  { %942 = vmatprep.subr.bf16.mxu0 %v1313_v0  ;;  %962 = vmatprep.subr.bf16.mxu1 %v1313_v0 }
  0x90   :  { %943 = vmatpush3.bf16.msra.mxu0 %v1072_v7  ;;  %963 = vmatpush3.bf16.msra.mxu1 %v1080_v12  ;;  %v1109_v12 = vld [vmem:[#allocation13 + $0x8] sm:$0xff]  }
  0x91   :  { %944 = vmatprep.subr.bf16.mxu0 %v1313_v0  ;;  %964 = vmatprep.subr.bf16.mxu1 %v1313_v0 }
  0x94   :  { %945 = vmatpush3.bf16.msra.mxu0 %v1073_v9  ;;  %965 = vmatpush3.bf16.msra.mxu1 %v1081_v16  ;;  %v1106_v9 = vld [vmem:[#allocation11 + $0x30] sm:$0xff]   ;;  %v1113_v16 = vld [vmem:[#allocation13 + $0x28] sm:$0xff]  }
  0x95   :  { %946 = vmatprep.subr.bf16.mxu0 %v1313_v0  ;;  %966 = vmatprep.subr.bf16.mxu1 %v1313_v0 }
  0x98   :  { %947 = vmatpush3.bf16.msra.mxu0 %v1074_v11  ;;  %967 = vmatpush3.bf16.msra.mxu1 %v1082_v18  ;;  %v1108_v11 = vld [vmem:[#allocation13] sm:$0xff]  }
  0x99   :  { %948 = vmatprep.subr.bf16.mxu0 %v1313_v0  ;;  %968 = vmatprep.subr.bf16.mxu1 %v1313_v0 }
  0x9c   :  { %949 = vmatpush3.bf16.msra.mxu0 %v1075_v13  ;;  %969 = vmatpush3.bf16.msra.mxu1 %v1083_v19  ;;  %v1110_v13 = vld [vmem:[#allocation13 + $0x10] sm:$0xff]  }
  0x9d   :  { %974 = vmatprep.subr.bf16.mxu0 %v1313_v0  ;;  %994 = vmatprep.subr.bf16.mxu1 %v1313_v0 }
  0x9f   :  { %951 = vmatmul.mubr.bf16.vlgmr.msra.gmra.mrb[0].mxu0 %v145_v17  ;;  %v853_v17 = vld [vmem:[%s1573_s7 + $0x3] ss:$0 sm:$0xff] }
  0xa0   :  { %990 = vmatprep.mubr.msk.bf16.mxu0 %vm1314_vm0, %v1313_v0  ;;  %975 = vmatpush3.bf16.msra.mxu0 %v1084_v20 }
  0xa1   :  { %976 = vmatprep.subr.bf16.mxu0 %v1313_v0 }
  0xa4   :  { %977 = vmatpush3.bf16.msra.mxu0 %v1085_v21 }
  0xa5   :  { %978 = vmatprep.subr.bf16.mxu0 %v1313_v0 }
  0xa8   :  { %979 = vmatpush3.bf16.msra.mxu0 %v1086_v22 }
  0xa9   :  { %980 = vmatprep.subr.bf16.mxu0 %v1313_v0 }
  0xac   :  { %981 = vmatpush3.bf16.msra.mxu0 %v1087_v23 }
  0xad   :  { %982 = vmatprep.subr.bf16.mxu0 %v1313_v0 }
  0xb0   :  { %983 = vmatpush3.bf16.msra.mxu0 %v1088_v24 }
  0xb1   :  { %984 = vmatprep.subr.bf16.mxu0 %v1313_v0 }
  0xb4   :  { %985 = vmatpush3.bf16.msra.mxu0 %v1089_v25 }
  0xb5   :  { %986 = vmatprep.subr.bf16.mxu0 %v1313_v0 }
  0xb8   :  { %987 = vmatpush3.bf16.msra.mxu0 %v1090_v36 }
  0xb9   :  { %988 = vmatprep.subr.bf16.mxu0 %v1313_v0 }
  0xbc   :  { %989 = vmatpush3.bf16.msra.mxu0 %v1091_v37 }
  0xbd   :  { %1014 = vmatprep.subr.bf16.mxu0 %v1313_v0 }
 0x172   :  { %v232_v27 = vpop.f32.mrb[0].mxu0 }
 0x173   :  { %v233_v28 = vadd.f32 %v826_v26, %v232_v27  ;;  %v952_v29 = vpop.f32.mrb[1].mxu0  ;;  %v1114_v27 = vld [vmem:[#allocation13 + $0x30] sm:$0xff]  }
 0x174   :  { %v235_v30 = vpop.f32.mrb[2].mxu0  ;;  %v862_v29 = vld [vmem:[%s1573_s7 + $0x4] ss:$0 sm:$0xff] }
 0x175   :  { %v236_v31 = vadd.f32 %v826_v26, %v235_v30  ;;  %v953_v32 = vpop.f32.mrb[3].mxu0  ;;  %v239_v33 = vmax.f32 %v233_v28, 0.0  ;;  %v1115_v28 = vld [vmem:[#allocation13 + $0x38] sm:$0xff]  }
 0x177   :  { %v240_v34 = vmax.f32 %v236_v31, 0.0 }
 0x179   :  { %v258_v35 = vpack.c.bf16 %v240_v34, %v239_v33 }
 0x17b   :  { %971 = vmatmul.mubr.bf16.vlgmr.msra.gmra.mrb[0].mxu1 %v258_v35 }
 0x17c   :  { %1010 = vmatprep.mubr.msk.bf16.mxu1 %vm1314_vm0, %v1313_v0  ;;  %995 = vmatpush3.bf16.msra.mxu1 %v1092_v38 }
 0x17d   :  { %996 = vmatprep.subr.bf16.mxu1 %v1313_v0 }
 0x180   :  { %997 = vmatpush3.bf16.msra.mxu1 %v1093_v39 }
 0x181   :  { %998 = vmatprep.subr.bf16.mxu1 %v1313_v0 }
 0x184   :  { %999 = vmatpush3.bf16.msra.mxu1 %v1094_v40 }
 0x185   :  { %1000 = vmatprep.subr.bf16.mxu1 %v1313_v0 }
 0x188   :  { %1001 = vmatpush3.bf16.msra.mxu1 %v1095_v41 }
 0x189   :  { %1002 = vmatprep.subr.bf16.mxu1 %v1313_v0 }
 0x18c   :  { %1003 = vmatpush3.bf16.msra.mxu1 %v1096_v42 }
 0x18d   :  { %1004 = vmatprep.subr.bf16.mxu1 %v1313_v0 }
 0x190   :  { %1005 = vmatpush3.bf16.msra.mxu1 %v1097_v43 }
 0x191   :  { %1006 = vmatprep.subr.bf16.mxu1 %v1313_v0 }
 0x194   :  { %1007 = vmatpush3.bf16.msra.mxu1 %v1098_v54 }
 0x195   :  { %1008 = vmatprep.subr.bf16.mxu1 %v1313_v0 }
 0x198   :  { %1009 = vmatpush3.bf16.msra.mxu1 %v1099_v55 }
 0x199   :  { %1034 = vmatprep.subr.bf16.mxu1 %v1313_v0 }
 0x24e   :  { %v345_v45 = vpop.f32.mrb[0].mxu1 }
 0x24f   :  { %v346_v46 = vadd.f32 %v835_v44, %v345_v45  ;;  %v972_v47 = vpop.f32.mrb[1].mxu1 }
 0x250   :  { %v348_v48 = vpop.f32.mrb[2].mxu1 }
 0x251   :  { %v349_v49 = vadd.f32 %v835_v44, %v348_v48  ;;  %v973_v50 = vpop.f32.mrb[3].mxu1  ;;  %v352_v51 = vmax.f32 %v346_v46, 0.0 }
 0x253   :  { %v353_v52 = vmax.f32 %v349_v49, 0.0 }
 0x255   :  { %v371_v53 = vpack.c.bf16 %v353_v52, %v352_v51 }
 0x257   :  { %991 = vmatmul.mubr.bf16.vlgmr.msra.gmra.mrb[4].mxu0 %v371_v53 }
 0x258   :  { %1030 = vmatprep.mubr.msk.bf16.mxu0 %vm1314_vm0, %v1313_v0  ;;  %1015 = vmatpush3.bf16.msra.mxu0 %v1100_v56 }
 0x259   :  { %1016 = vmatprep.subr.bf16.mxu0 %v1313_v0 }
 0x25c   :  { %1017 = vmatpush3.bf16.msra.mxu0 %v1101_v57 }
 0x25d   :  { %1018 = vmatprep.subr.bf16.mxu0 %v1313_v0 }
 0x260   :  { %1019 = vmatpush3.bf16.msra.mxu0 %v1102_v58 }
 0x261   :  { %1020 = vmatprep.subr.bf16.mxu0 %v1313_v0 }
 0x264   :  { %1021 = vmatpush3.bf16.msra.mxu0 %v1103_v59 }
 0x265   :  { %1022 = vmatprep.subr.bf16.mxu0 %v1313_v0 }
 0x268   :  { %1023 = vmatpush3.bf16.msra.mxu0 %v1104_v60 }
 0x269   :  { %1024 = vmatprep.subr.bf16.mxu0 %v1313_v0 }
 0x26c   :  { %1025 = vmatpush3.bf16.msra.mxu0 %v1105_v61 }
 0x26d   :  { %1026 = vmatprep.subr.bf16.mxu0 %v1313_v0 }
 0x270   :  { %1027 = vmatpush3.bf16.msra.mxu0 %v1106_v9 }
 0x271   :  { %1028 = vmatprep.subr.bf16.mxu0 %v1313_v0 }
 0x274   :  { %1029 = vmatpush3.bf16.msra.mxu0 %v1107_v10 }
 0x32a   :  { %v458_v63 = vpop.f32.mrb[4].mxu0 }
 0x32b   :  { %v459_v1 = vadd.f32 %v844_v62, %v458_v63  ;;  %v992_v2 = vpop.f32.mrb[5].mxu0 }
 0x32c   :  { %v461_v3 = vpop.f32.mrb[6].mxu0 }
 0x32d   :  { %v462_v4 = vadd.f32 %v844_v62, %v461_v3  ;;  %v993_v5 = vpop.f32.mrb[7].mxu0  ;;  %v465_v6 = vmax.f32 %v459_v1, 0.0 }
 0x32f   :  { %v466_v7 = vmax.f32 %v462_v4, 0.0 }
 0x331   :  { %v484_v8 = vpack.c.bf16 %v466_v7, %v465_v6 }
 0x333   :  { %1011 = vmatmul.mubr.bf16.vlgmr.msra.gmra.mrb[4].mxu1 %v484_v8 }
 0x334   :  { %1050 = vmatprep.mubr.msk.bf16.mxu1 %vm1314_vm0, %v1313_v0  ;;  %1035 = vmatpush3.bf16.msra.mxu1 %v1108_v11 }
 0x335   :  { %1036 = vmatprep.subr.bf16.mxu1 %v1313_v0 }
 0x338   :  { %1037 = vmatpush3.bf16.msra.mxu1 %v1109_v12 }
 0x339   :  { %1038 = vmatprep.subr.bf16.mxu1 %v1313_v0 }
 0x33c   :  { %1039 = vmatpush3.bf16.msra.mxu1 %v1110_v13 }
 0x33d   :  { %1040 = vmatprep.subr.bf16.mxu1 %v1313_v0 }
 0x340   :  { %1041 = vmatpush3.bf16.msra.mxu1 %v1111_v14 }
 0x341   :  { %1042 = vmatprep.subr.bf16.mxu1 %v1313_v0 }
 0x344   :  { %1043 = vmatpush3.bf16.msra.mxu1 %v1112_v15 }
 0x345   :  { %1044 = vmatprep.subr.bf16.mxu1 %v1313_v0 }
 0x348   :  { %1045 = vmatpush3.bf16.msra.mxu1 %v1113_v16 }
 0x349   :  { %1046 = vmatprep.subr.bf16.mxu1 %v1313_v0 }
 0x34c   :  { %1047 = vmatpush3.bf16.msra.mxu1 %v1114_v27 }
 0x34d   :  { %1048 = vmatprep.subr.bf16.mxu1 %v1313_v0  ;;  %v871_v0 = vld [vmem:[%s1573_s7 + $0x5] ss:$0 sm:$0xff] }
 0x350   :  { %1049 = vmatpush3.bf16.msra.mxu1 %v1115_v28 }
 0x406   :  { %v571_v18 = vpop.f32.mrb[4].mxu1 }
 0x407   :  { %v572_v19 = vadd.f32 %v853_v17, %v571_v18  ;;  %v1012_v20 = vpop.f32.mrb[5].mxu1 }
 0x408   :  { %v574_v21 = vpop.f32.mrb[6].mxu1 }
 0x409   :  { %v575_v22 = vadd.f32 %v853_v17, %v574_v21  ;;  %v1013_v23 = vpop.f32.mrb[7].mxu1  ;;  %v578_v24 = vmax.f32 %v572_v19, 0.0 }
 0x40b   :  { %v579_v25 = vmax.f32 %v575_v22, 0.0 }
 0x40d   :  { %v597_v26 = vpack.c.bf16 %v579_v25, %v578_v24 }
 0x40f   :  { %1031 = vmatmul.mubr.bf16.vlgmr.msra.gmra.mrb[8].mxu0 %v597_v26 }
 0x4e2   :  { %v684_v30 = vpop.f32.mrb[8].mxu0 }
 0x4e3   :  { %v685_v31 = vadd.f32 %v862_v29, %v684_v30  ;;  %v1032_v32 = vpop.f32.mrb[9].mxu0 }
 0x4e4   :  { %v687_v33 = vpop.f32.mrb[10].mxu0 }
 0x4e5   :  { %v688_v34 = vadd.f32 %v862_v29, %v687_v33  ;;  %v1033_v35 = vpop.f32.mrb[11].mxu0  ;;  %v691_v36 = vmax.f32 %v685_v31, 0.0 }
 0x4e7   :  { %v692_v37 = vmax.f32 %v688_v34, 0.0 }
 0x4e9   :  { %v710_v38 = vpack.c.bf16 %v692_v37, %v691_v36 }
 0x4eb   :  { %1051 = vmatmul.mubr.bf16.vlgmr.msra.gmra.mrb[8].mxu1 %v710_v38 }
 0x5be   :  { %v797_v39 = vpop.f32.mrb[8].mxu1 }
 0x5bf   :  { %v798_v40 = vadd.f32 %v871_v0, %v797_v39  ;;  %v1052_v41 = vpop.f32.mrb[9].mxu1 }
 0x5c0   :  { %v800_v42 = vpop.f32.mrb[10].mxu1 }
 0x5c1   :  { %804 = vst [vmem:[#allocation14] sm:$0xff] %v798_v40  ;;  %v801_v43 = vadd.f32 %v871_v0, %v800_v42  ;;  %v1053_v44 = vpop.f32.mrb[11].mxu1 }
 0x5c3   :  { %805 = vst [vmem:[#allocation14 + $0x8] sm:$0xff] %v801_v43 }
 0x5c4   :  { %1281 = shalt.err (!%p1278_p4)
}
 0x5c5   :  { %s1282_s13 = scalar_lea.hbm %s1574_s8, 256 }
 0x5c6   :  { %p1283_p5 = scmp.ne.s32.totalorder %s1574_s8, %s1282_s13  ;;  %p1286_p6 = scmp.lt.u32.totalorder %s1282_s13, %s1574_s8 }
 0x5c8   :  { %p1288_p7 = pnand %p1286_p6, %p1283_p5 }
 0x5ca   :  { %1291 = shalt.err (!%p1288_p7)
}
 0x5cb   :  { %817 = dma.vmem_to_hbm [thread:$0]  %s812_s2, 256, %s1574_s8, [#allocation4], %s1308_s5, %s1308_s5, %s1309_s22  }
 0x5cc   :  { %1300 = dma.done.wait [#allocation4], 256  }
 0x5cd   :  { %1301 = vsyncadd [#allocation4], 4294967040 }
 0x5ce   :  { %821 = vsyncpa [#allocation3], 1 }
 0x5cf   :  { %822 = vsyncpa [#allocation6], 1 }
 0x5d0   :  { %823 = vsyncpa [#allocation9], 1 }
 0x5d1   :  { %824 = vsyncpa [#allocation12], 1 }
 0x5d2   :  { %825 = vsyncpa [#allocation4], 1 }

</bundles_post_ra>
